<compile_context>
chip_gen: v7x
topology: tpu7x:2x2x1
jax: 0.10.0
libtpu: 0.0.40
codegen_flags: <defaults>
</compile_context>

<pallas_src>
import functools

import jax
import jax.numpy as jnp
from jax.experimental import pallas as pl
from jax.experimental.pallas import tpu as pltpu


def _round_up(x, m):
    return ((x + m - 1) // m) * m


# ----------------------------------------------------------------------------
# Kernel 1: all GRU layers.  grid = (num_layers,), marked "arbitrary" because
# layer l consumes the hidden sequence layer l-1 left in VMEM scratch.
# ----------------------------------------------------------------------------
def gru_layers_kernel(x0_ref, wih0_ref, bgi0_ref, wihr_ref, bgir_ref,
                      whh_ref, bhn_ref, hcat_ref, gi_scr, y_scr,
                      *, T, B, Hp, unroll):
    """Refs (per grid step = one GRU layer l):
      x0_ref   : (T*B, Ep) bf16   time-major padded embeddings (invariant)
      wih0_ref : (Ep, 3Hp) bf16   layer-0 W_ih^T (invariant)
      bgi0_ref : (1, 3Hp)  f32    layer-0 folded bias (invariant)
      wihr_ref : (1, Hp, 3Hp) bf16  W_ih^T of layer l (slot 0 is a dummy)
      bgir_ref : (1, 1, 3Hp) f32    folded bias of layer l (slot 0 dummy)
      whh_ref  : (1, Hp, 3Hp) bf16  W_hh^T of layer l
      bhn_ref  : (1, 1, Hp)  f32    b_hn of layer l
      hcat_ref : (B, Hp)     f32    layer-l slab of the concatenated h_n
      gi_scr   : VMEM (T*B, 3Hp) f32   hoisted input gates, current layer
      y_scr    : VMEM (T*B, Hp)  f32   hidden sequence handed to layer l+1
    """
    l = pl.program_id(0)

    # Input-to-hidden for ALL timesteps of this layer: one batched bf16 MXU
    # matmul, hoisted off the serial recurrence (biases pre-folded).
    @pl.when(l == 0)
    def _():
        gi_scr[...] = (jnp.dot(x0_ref[...], wih0_ref[...],
                               preferred_element_type=jnp.float32)
                       + bgi0_ref[...])

    @pl.when(l > 0)
    def _():
        gi_scr[...] = (jnp.dot(y_scr[...].astype(jnp.bfloat16), wihr_ref[0],
                               preferred_element_type=jnp.float32)
                       + bgir_ref[0])

    w_hh = whh_ref[0]                                    # (Hp, 3Hp) bf16
    # Hoisted out of the (unrolled) time loop: JAX does not CSE broadcasts.
    b_hn = jnp.broadcast_to(bhn_ref[0], (B, Hp))         # (B, Hp) f32

    def step(t, h):
        row = pl.multiple_of(t * B, B)
        gi = gi_scr[pl.ds(row, B), :]                    # (B, 3Hp) f32
        # Only h @ W_hh^T remains on the serial path (bf16 MXU, f32 acc).
        # TODO(synk): on v5e this RHS could be held in MXU staging registers
        # across the whole T loop via pltpu.matmul_push_rhs/acc_lhs/pop.
        gh = jnp.dot(h.astype(jnp.bfloat16), w_hh,
                     preferred_element_type=jnp.float32)
        r = jax.nn.sigmoid(gi[:, 0 * Hp:1 * Hp] + gh[:, 0 * Hp:1 * Hp])
        z = jax.nn.sigmoid(gi[:, 1 * Hp:2 * Hp] + gh[:, 1 * Hp:2 * Hp])
        n = jnp.tanh(gi[:, 2 * Hp:3 * Hp] + r * (gh[:, 2 * Hp:3 * Hp] + b_hn))
        h_new = (1.0 - z) * n + z * h
        y_scr[pl.ds(row, B), :] = h_new                  # sequence for layer l+1
        return h_new

    # Serial recurrence over time, entirely in VMEM/vregs.
    h_fin = jax.lax.fori_loop(0, T, step, jnp.zeros((B, Hp), jnp.float32),
                              unroll=unroll)

    hcat_ref[...] = h_fin                                # (B, Hp) slab of h_cat


# ----------------------------------------------------------------------------
# Kernel 2: final Linear, tiled over vocab lanes.  grid = (Vp // v_tile,),
# "parallel" (independent lane tiles -> second TensorCore on v7x; FC weight
# tiles stream through VMEM and each logits store is lane-dense).
# ----------------------------------------------------------------------------
def fc_kernel(hcat_ref, wfc_ref, bfc_ref, logits_ref):
    logits_ref[...] = (jnp.dot(hcat_ref[...].astype(jnp.bfloat16),
                               wfc_ref[...],
                               preferred_element_type=jnp.float32)
                       + bfc_ref[...])


# ----------------------------------------------------------------------------
# Host-side parameter prep: transpose to row-major matmul layout, zero-pad all
# gate/hidden/vocab dims to 128-lane multiples, fold b_ih + b_hh for r/z, and
# cast matmul weights to bf16.  Pad lanes stay exactly zero in the recurrence.
# ----------------------------------------------------------------------------
def prepare_params(pt):
    emb = pt["embedding"]                    # (V, E)
    V, E = emb.shape
    layers_pt = pt["layers"]
    L = len(layers_pt)
    H = layers_pt[0]["w_hh"].shape[1]
    Hp = _round_up(H, 128)
    Ep = _round_up(E, 128)
    Vp = _round_up(V, 128)
    # NOTE: at tiny H (demo H=32) the 128-lane gate padding does 4x the MXU/VPU
    # work; this disappears for production H >= 128.

    def pad_gates_T(w, in_dim, in_pad):
        # w: (3H, in_dim) PyTorch layout -> (in_pad, 3*Hp), transposed,
        # each gate placed in its own Hp-wide lane block.
        out = jnp.zeros((in_pad, 3 * Hp), jnp.float32)
        wt = w.T
        for g in range(3):
            out = out.at[:in_dim, g * Hp:g * Hp + H].set(wt[:, g * H:(g + 1) * H])
        return out

    def fold_gate_bias(b_ih, b_hh):
        # r,z: b_ih + b_hh folded; n: b_ih only (b_hn stays inside r*(.)).
        out = jnp.zeros((1, 3 * Hp), jnp.float32)
        for g in range(3):
            v = b_ih[g * H:(g + 1) * H]
            if g < 2:
                v = v + b_hh[g * H:(g + 1) * H]
            out = out.at[0, g * Hp:g * Hp + H].set(v)
        return out

    wih0 = pad_gates_T(layers_pt[0]["w_ih"], E, Ep).astype(jnp.bfloat16)
    bgi0 = fold_gate_bias(layers_pt[0]["b_ih"], layers_pt[0]["b_hh"])

    # Layers 1..L-1 stacked with a dummy zero block at slot 0 so the per-layer
    # grid index_map is simply (l, 0, 0).  The slot-0 DMA is tiny and unused.
    wihr = jnp.zeros((L, Hp, 3 * Hp), jnp.float32)
    bgir = jnp.zeros((L, 1, 3 * Hp), jnp.float32)
    for l in range(1, L):
        wihr = wihr.at[l].set(pad_gates_T(layers_pt[l]["w_ih"], H, Hp))
        bgir = bgir.at[l].set(fold_gate_bias(layers_pt[l]["b_ih"],
                                             layers_pt[l]["b_hh"]))
    wihr = wihr.astype(jnp.bfloat16)

    whh = jnp.stack([pad_gates_T(layers_pt[l]["w_hh"], H, Hp)
                     for l in range(L)]).astype(jnp.bfloat16)
    bhn = jnp.stack([jnp.zeros((1, Hp), jnp.float32)
                     .at[0, :H].set(layers_pt[l]["b_hh"][2 * H:3 * H])
                     for l in range(L)])

    # FC weight as (L*Hp, Vp): rows match the h_cat column layout.
    wfct = pt["w_fc"].T                      # (L*H, V)
    wfc = jnp.zeros((L * Hp, Vp), jnp.float32)
    for l in range(L):
        wfc = wfc.at[l * Hp:l * Hp + H, :V].set(wfct[l * H:(l + 1) * H, :])
    wfc = wfc.astype(jnp.bfloat16)
    bfc = jnp.zeros((1, Vp), jnp.float32).at[0, :V].set(pt["b_fc"])

    return dict(embedding=emb, wih0=wih0, bgi0=bgi0, wihr=wihr, bgir=bgir,
                whh=whh, bhn=bhn, wfc=wfc, bfc=bfc,
                dims=dict(V=V, E=E, H=H, L=L, Hp=Hp, Ep=Ep, Vp=Vp))


# ----------------------------------------------------------------------------
# Full forward: embedding gather (JAX glue) + two pallas_calls.
# ----------------------------------------------------------------------------
def gru_compress_forward(tokens, prep, *, v_tile=None):
    d = prep["dims"]
    V, E, Ep, Hp, Vp, L = d["V"], d["E"], d["Ep"], d["Hp"], d["Vp"], d["L"]
    B, T = tokens.shape
    Bp = _round_up(B, 8)                     # sublane-align the batch
    TB = T * Bp
    threeHp = 3 * Hp
    LHp = L * Hp

    # Embedding lookup is a gather -> plain JAX glue; then time-major slab.
    embeds = prep["embedding"][tokens]                       # (B, T, E)
    if Bp != B:
        embeds = jnp.pad(embeds, ((0, Bp - B), (0, 0), (0, 0)))
    x0 = jnp.transpose(embeds, (1, 0, 2)).reshape(TB, E)     # row = t*Bp + b
    x0 = jnp.pad(x0, ((0, 0), (0, Ep - E))).astype(jnp.bfloat16)

    # Full unroll only at small fixed T; partial unroll otherwise (serial
    # recurrence gains nothing from huge unrolled live ranges).
    unroll = T if T <= 16 else 8

    # --- Call 1: GRU layers (layer axis streamed, "arbitrary") -------------
    hcat = pl.pallas_call(
        functools.partial(gru_layers_kernel, T=T, B=Bp, Hp=Hp, unroll=unroll),
        out_shape=jax.ShapeDtypeStruct((Bp, LHp), jnp.float32),
        grid_spec=pltpu.PrefetchScalarGridSpec(
            num_scalar_prefetch=0,
            grid=(L,),
            in_specs=[
                pl.BlockSpec((TB, Ep), lambda l: (0, 0)),              # x0
                pl.BlockSpec((Ep, threeHp), lambda l: (0, 0)),         # W_ih^T l0
                pl.BlockSpec((1, threeHp), lambda l: (0, 0)),          # bias l0
                pl.BlockSpec((1, Hp, threeHp), lambda l: (l, 0, 0)),   # W_ih^T l
                pl.BlockSpec((1, 1, threeHp), lambda l: (l, 0, 0)),    # bias l
                pl.BlockSpec((1, Hp, threeHp), lambda l: (l, 0, 0)),   # W_hh^T l
                pl.BlockSpec((1, 1, Hp), lambda l: (l, 0, 0)),         # b_hn l
            ],
            out_specs=pl.BlockSpec((Bp, Hp), lambda l: (0, l)),        # h_cat slab
            scratch_shapes=[
                pltpu.VMEM((TB, threeHp), jnp.float32),   # gi, current layer
                pltpu.VMEM((TB, Hp), jnp.float32),        # inter-layer y_seq
            ],
        ),
        compiler_params=pltpu.CompilerParams(
            dimension_semantics=("arbitrary",)),
    )(x0, prep["wih0"], prep["bgi0"], prep["wihr"], prep["bgir"],
      prep["whh"], prep["bhn"])

    # --- Call 2: FC over vocab-lane tiles ("parallel") ---------------------
    if v_tile is None:
        v_tile = next(t for t in (512, 256, 128) if Vp % t == 0)

    logits_p = pl.pallas_call(
        fc_kernel,
        out_shape=jax.ShapeDtypeStruct((Bp, Vp), jnp.float32),
        grid_spec=pltpu.PrefetchScalarGridSpec(
            num_scalar_prefetch=0,
            grid=(Vp // v_tile,),
            in_specs=[
                pl.BlockSpec((Bp, LHp), lambda j: (0, 0)),             # h_cat
                pl.BlockSpec((LHp, v_tile), lambda j: (0, j)),         # FC weight
                pl.BlockSpec((1, v_tile), lambda j: (0, j)),           # FC bias
            ],
            out_specs=pl.BlockSpec((Bp, v_tile), lambda j: (0, j)),    # logits
        ),
        compiler_params=pltpu.CompilerParams(
            dimension_semantics=("parallel",)),
    )(hcat, prep["wfc"], prep["bfc"])

    return logits_p[:B, :V]


# ----------------------------------------------------------------------------
# Pure-JAX f32 reference mimicking PyTorch nn.GRU / nn.Linear exactly.
# ----------------------------------------------------------------------------
def gru_compress_ref(tokens, pt):
    emb = pt["embedding"][tokens]            # (B, T, E)
    B, T, _ = emb.shape
    inp = emb
    h_fins = []
    for layer in pt["layers"]:
        w_ih, w_hh = layer["w_ih"], layer["w_hh"]      # (3H, I), (3H, H)
        b_ih, b_hh = layer["b_ih"], layer["b_hh"]
        H = w_hh.shape[1]
        h = jnp.zeros((B, H), jnp.float32)
        outs = []
        for t in range(T):
            gi = inp[:, t] @ w_ih.T + b_ih
            gh = h @ w_hh.T + b_hh
            r = jax.nn.sigmoid(gi[:, :H] + gh[:, :H])
            z = jax.nn.sigmoid(gi[:, H:2 * H] + gh[:, H:2 * H])
            n = jnp.tanh(gi[:, 2 * H:] + r * gh[:, 2 * H:])
            h = (1.0 - z) * n + z * h
            outs.append(h)
        inp = jnp.stack(outs, axis=1)
        h_fins.append(h)
    h_n = jnp.stack(h_fins, 0)                              # (L, B, H)
    h_cat = jnp.transpose(h_n, (1, 0, 2)).reshape(B, -1)
    return h_cat @ pt["w_fc"].T + pt["b_fc"]


# ----------------------------------------------------------------------------
# Deterministic synthetic parameters in PyTorch layout / shapes.
# ----------------------------------------------------------------------------
def init_pt_params(key, vocab_size, embed_size, hidden_size, num_layers):
    keys = jax.random.split(key, 3 + 4 * num_layers)
    s = 0.1
    pt = {
        "embedding": s * jax.random.normal(keys[0], (vocab_size, embed_size),
                                           jnp.float32),
        "layers": [],
        "w_fc": s * jax.random.normal(keys[1], (vocab_size,
                                                num_layers * hidden_size),
                                      jnp.float32),
        "b_fc": s * jax.random.normal(keys[2], (vocab_size,), jnp.float32),
    }
    for l in range(num_layers):
        in_size = embed_size if l == 0 else hidden_size
        k = keys[3 + 4 * l: 3 + 4 * (l + 1)]
        pt["layers"].append({
            "w_ih": s * jax.random.normal(k[0], (3 * hidden_size, in_size),
                                          jnp.float32),
            "w_hh": s * jax.random.normal(k[1], (3 * hidden_size, hidden_size),
                                          jnp.float32),
            "b_ih": s * jax.random.normal(k[2], (3 * hidden_size,), jnp.float32),
            "b_hh": s * jax.random.normal(k[3], (3 * hidden_size,), jnp.float32),
        })
    return pt


if __name__ == "__main__":
    # Small shapes consistent with the module's forward.
    batch, seq = 8, 8
    vocab_size, embed_size, hidden_size, num_layers = 128, 64, 32, 2

    key = jax.random.PRNGKey(0)
    pkey, tkey = jax.random.split(key)
    pt_params = init_pt_params(pkey, vocab_size, embed_size, hidden_size,
                               num_layers)
    tokens = jax.random.randint(tkey, (batch, seq), 0, vocab_size,
                                dtype=jnp.int32)

    prep = prepare_params(pt_params)
    logits = jax.block_until_ready(gru_compress_forward(tokens, prep))
    assert logits.shape == (batch, vocab_size)

    ref = jax.block_until_ready(gru_compress_ref(tokens, pt_params))
    max_err = jnp.max(jnp.abs(logits - ref))
    # bf16 MXU operands (f32 accumulation) -> relaxed parity tolerance.
    assert jnp.allclose(logits, ref, atol=2e-2, rtol=2e-2), \
        f"mismatch vs reference, max |diff| = {max_err}"

    print("KERNEL_OK")
</pallas_src>

<mosaic_0001>
module attributes {stable_mosaic.version = 11 : i64} {
  func.func @gru_layers_kernel(%arg0: i32, %arg1: memref<64x128xbf16, #tpu.memory_space<vmem>>, %arg2: memref<128x384xbf16, #tpu.memory_space<vmem>>, %arg3: memref<1x384xf32, #tpu.memory_space<vmem>>, %arg4: memref<1x128x384xbf16, #tpu.memory_space<vmem>>, %arg5: memref<1x1x384xf32, #tpu.memory_space<vmem>>, %arg6: memref<1x128x384xbf16, #tpu.memory_space<vmem>>, %arg7: memref<1x1x128xf32, #tpu.memory_space<vmem>>, %arg8: memref<8x128xf32, #tpu.memory_space<vmem>>, %arg9: memref<64x384xf32, #tpu.memory_space<vmem>>, %arg10: memref<64x128xf32, #tpu.memory_space<vmem>>) attributes {dimension_semantics = [#tpu.dimension_semantics<arbitrary>], iteration_bounds = array<i64: 2>, scalar_prefetch = 0 : i64, scratch_operands = 2 : i64, tpu.core_type = #tpu.core_type<tc>, window_params = [{pipeline_mode = #tpu.pipeline_mode<synchronous>, transform_indices = @transform_0, window_bounds = array<i64: 64, 128>}, {pipeline_mode = #tpu.pipeline_mode<synchronous>, transform_indices = @transform_1, window_bounds = array<i64: 128, 384>}, {pipeline_mode = #tpu.pipeline_mode<synchronous>, transform_indices = @transform_2, window_bounds = array<i64: 1, 384>}, {transform_indices = @transform_3, window_bounds = array<i64: 1, 128, 384>}, {transform_indices = @transform_4, window_bounds = array<i64: 1, 1, 384>}, {transform_indices = @transform_5, window_bounds = array<i64: 1, 128, 384>}, {transform_indices = @transform_6, window_bounds = array<i64: 1, 1, 128>}, {transform_indices = @transform_7, window_bounds = array<i64: 8, 128>}]} {
    %c0_i32 = arith.constant 0 : i32
    %0 = arith.cmpi eq, %arg0, %c0_i32 : i32
    %1 = arith.extui %0 : i1 to i32
    %c0_i32_0 = arith.constant 0 : i32
    %2 = arith.cmpi ne, %1, %c0_i32_0 : i32
    scf.if %2 {
      %c0_67 = arith.constant 0 : index
      %c0_68 = arith.constant 0 : index
      %294 = vector.load %arg1[%c0_67, %c0_68] : memref<64x128xbf16, #tpu.memory_space<vmem>>, vector<64x128xbf16>
      %c0_69 = arith.constant 0 : index
      %c0_70 = arith.constant 0 : index
      %295 = vector.load %arg2[%c0_69, %c0_70] : memref<128x384xbf16, #tpu.memory_space<vmem>>, vector<128x384xbf16>
      %cst_71 = arith.constant dense<0.000000e+00> : vector<64x384xf32>
      %296 = tpu.matmul %294, %295, %cst_71 {dimension_numbers = #tpu.dot_dimension_numbers<[1], [0], [0], [1], [0, 0, 1, 1], [], []>} : vector<64x128xbf16>, vector<128x384xbf16>, vector<64x384xf32> -> vector<64x384xf32>
      %c0_72 = arith.constant 0 : index
      %c0_73 = arith.constant 0 : index
      %297 = vector.load %arg3[%c0_72, %c0_73] : memref<1x384xf32, #tpu.memory_space<vmem>>, vector<1x384xf32>
      %298 = vector.broadcast %297 : vector<1x384xf32> to vector<64x384xf32>
      %299 = arith.addf %296, %298 : vector<64x384xf32>
      %c0_74 = arith.constant 0 : index
      %c0_75 = arith.constant 0 : index
      %300 = vector.load %arg9[%c0_74, %c0_75] : memref<64x384xf32, #tpu.memory_space<vmem>>, vector<64x384xf32>
      tpu.vector_store %arg9[%c0_74, %c0_75], %299 {strides = array<i32>} : memref<64x384xf32, #tpu.memory_space<vmem>>, vector<64x384xf32>,
    } else {
    }
    %c0_i32_1 = arith.constant 0 : i32
    %3 = arith.cmpi sgt, %arg0, %c0_i32_1 : i32
    %4 = arith.extui %3 : i1 to i32
    %c0_i32_2 = arith.constant 0 : i32
    %5 = arith.cmpi ne, %4, %c0_i32_2 : i32
    scf.if %5 {
      %c0_67 = arith.constant 0 : index
      %c0_68 = arith.constant 0 : index
      %294 = vector.load %arg10[%c0_67, %c0_68] : memref<64x128xf32, #tpu.memory_space<vmem>>, vector<64x128xf32>
      %295 = arith.truncf %294 : vector<64x128xf32> to vector<64x128xbf16>
      %c0_69 = arith.constant 0 : index
      %c0_70 = arith.constant 0 : index
      %c0_71 = arith.constant 0 : index
      %296 = vector.load %arg4[%c0_69, %c0_70, %c0_71] : memref<1x128x384xbf16, #tpu.memory_space<vmem>>, vector<1x128x384xbf16>
      %297 = vector.shape_cast %296 : vector<1x128x384xbf16> to vector<128x384xbf16>
      %cst_72 = arith.constant dense<0.000000e+00> : vector<64x384xf32>
      %298 = tpu.matmul %295, %297, %cst_72 {dimension_numbers = #tpu.dot_dimension_numbers<[1], [0], [0], [1], [0, 0, 1, 1], [], []>} : vector<64x128xbf16>, vector<128x384xbf16>, vector<64x384xf32> -> vector<64x384xf32>
      %c0_73 = arith.constant 0 : index
      %c0_74 = arith.constant 0 : index
      %c0_75 = arith.constant 0 : index
      %299 = vector.load %arg5[%c0_73, %c0_74, %c0_75] : memref<1x1x384xf32, #tpu.memory_space<vmem>>, vector<1x1x384xf32>
      %300 = vector.shape_cast %299 : vector<1x1x384xf32> to vector<1x384xf32>
      %301 = vector.broadcast %300 : vector<1x384xf32> to vector<64x384xf32>
      %302 = arith.addf %298, %301 : vector<64x384xf32>
      %c0_76 = arith.constant 0 : index
      %c0_77 = arith.constant 0 : index
      %303 = vector.load %arg9[%c0_76, %c0_77] : memref<64x384xf32, #tpu.memory_space<vmem>>, vector<64x384xf32>
      tpu.vector_store %arg9[%c0_76, %c0_77], %302 {strides = array<i32>} : memref<64x384xf32, #tpu.memory_space<vmem>>, vector<64x384xf32>,
    } else {
    }
    %c0 = arith.constant 0 : index
    %c0_3 = arith.constant 0 : index
    %c0_4 = arith.constant 0 : index
    %6 = vector.load %arg6[%c0, %c0_3, %c0_4] : memref<1x128x384xbf16, #tpu.memory_space<vmem>>, vector<1x128x384xbf16>
    %7 = vector.shape_cast %6 : vector<1x128x384xbf16> to vector<128x384xbf16>
    %c0_5 = arith.constant 0 : index
    %c0_6 = arith.constant 0 : index
    %c0_7 = arith.constant 0 : index
    %8 = vector.load %arg7[%c0_5, %c0_6, %c0_7] : memref<1x1x128xf32, #tpu.memory_space<vmem>>, vector<1x1x128xf32>
    %9 = vector.shape_cast %8 : vector<1x1x128xf32> to vector<1x128xf32>
    %10 = vector.shape_cast %9 : vector<1x128xf32> to vector<1x128xf32>
    %11 = vector.broadcast %10 : vector<1x128xf32> to vector<8x128xf32>
    %cst = arith.constant 0.000000e+00 : f32
    %12 = vector.broadcast %cst : f32 to vector<8x128xf32>
    %c0_i32_8 = arith.constant 0 : i32
    %c8_i32 = arith.constant 8 : i32
    %13 = arith.muli %c0_i32_8, %c8_i32 : i32
    %14 = tpu.assume_multiple %13, 8 : i32
    %15 = arith.index_cast %14 : i32 to index
    %c0_9 = arith.constant 0 : index
    %16 = vector.load %arg9[%15, %c0_9] : memref<64x384xf32, #tpu.memory_space<vmem>>, vector<8x384xf32>
    %17 = arith.truncf %12 : vector<8x128xf32> to vector<8x128xbf16>
    %cst_10 = arith.constant dense<0.000000e+00> : vector<8x384xf32>
    %18 = tpu.matmul %17, %7, %cst_10 {dimension_numbers = #tpu.dot_dimension_numbers<[1], [0], [0], [1], [0, 0, 1, 1], [], []>} : vector<8x128xbf16>, vector<128x384xbf16>, vector<8x384xf32> -> vector<8x384xf32>
    %19 = vector.extract_strided_slice %16 {offsets = [0, 0], sizes = [8, 128], strides = [1, 1]} : vector<8x384xf32> to vector<8x128xf32>
    %20 = vector.extract_strided_slice %18 {offsets = [0, 0], sizes = [8, 128], strides = [1, 1]} : vector<8x384xf32> to vector<8x128xf32>
    %21 = arith.addf %19, %20 : vector<8x128xf32>
    %22 = arith.negf %21 : vector<8x128xf32>
    %23 = math.exp %22 : vector<8x128xf32>
    %cst_11 = arith.constant 1.000000e+00 : f32
    %24 = vector.broadcast %cst_11 : f32 to vector<8x128xf32>
    %25 = arith.addf %24, %23 : vector<8x128xf32>
    %26 = arith.divf %24, %25 : vector<8x128xf32>
    %27 = vector.extract_strided_slice %16 {offsets = [0, 128], sizes = [8, 128], strides = [1, 1]} : vector<8x384xf32> to vector<8x128xf32>
    %28 = vector.extract_strided_slice %18 {offsets = [0, 128], sizes = [8, 128], strides = [1, 1]} : vector<8x384xf32> to vector<8x128xf32>
    %29 = arith.addf %27, %28 : vector<8x128xf32>
    %30 = arith.negf %29 : vector<8x128xf32>
    %31 = math.exp %30 : vector<8x128xf32>
    %cst_12 = arith.constant 1.000000e+00 : f32
    %32 = vector.broadcast %cst_12 : f32 to vector<8x128xf32>
    %33 = arith.addf %32, %31 : vector<8x128xf32>
    %34 = arith.divf %32, %33 : vector<8x128xf32>
    %35 = vector.extract_strided_slice %16 {offsets = [0, 256], sizes = [8, 128], strides = [1, 1]} : vector<8x384xf32> to vector<8x128xf32>
    %36 = vector.extract_strided_slice %18 {offsets = [0, 256], sizes = [8, 128], strides = [1, 1]} : vector<8x384xf32> to vector<8x128xf32>
    %37 = arith.addf %36, %11 : vector<8x128xf32>
    %38 = arith.mulf %26, %37 : vector<8x128xf32>
    %39 = arith.addf %35, %38 : vector<8x128xf32>
    %40 = math.tanh %39 : vector<8x128xf32>
    %cst_13 = arith.constant 1.000000e+00 : f32
    %41 = vector.broadcast %cst_13 : f32 to vector<8x128xf32>
    %42 = arith.subf %41, %34 : vector<8x128xf32>
    %43 = arith.mulf %42, %40 : vector<8x128xf32>
    %44 = arith.mulf %34, %12 : vector<8x128xf32>
    %45 = arith.addf %43, %44 : vector<8x128xf32>
    %46 = arith.index_cast %14 : i32 to index
    %c0_14 = arith.constant 0 : index
    %47 = vector.load %arg10[%46, %c0_14] : memref<64x128xf32, #tpu.memory_space<vmem>>, vector<8x128xf32>
    tpu.vector_store %arg10[%46, %c0_14], %45 {strides = array<i32>} : memref<64x128xf32, #tpu.memory_space<vmem>>, vector<8x128xf32>,
    %c1_i32 = arith.constant 1 : i32
    %c8_i32_15 = arith.constant 8 : i32
    %48 = arith.muli %c1_i32, %c8_i32_15 : i32
    %49 = tpu.assume_multiple %48, 8 : i32
    %50 = arith.index_cast %49 : i32 to index
    %c0_16 = arith.constant 0 : index
    %51 = vector.load %arg9[%50, %c0_16] : memref<64x384xf32, #tpu.memory_space<vmem>>, vector<8x384xf32>
    %52 = arith.truncf %45 : vector<8x128xf32> to vector<8x128xbf16>
    %cst_17 = arith.constant dense<0.000000e+00> : vector<8x384xf32>
    %53 = tpu.matmul %52, %7, %cst_17 {dimension_numbers = #tpu.dot_dimension_numbers<[1], [0], [0], [1], [0, 0, 1, 1], [], []>} : vector<8x128xbf16>, vector<128x384xbf16>, vector<8x384xf32> -> vector<8x384xf32>
    %54 = vector.extract_strided_slice %51 {offsets = [0, 0], sizes = [8, 128], strides = [1, 1]} : vector<8x384xf32> to vector<8x128xf32>
    %55 = vector.extract_strided_slice %53 {offsets = [0, 0], sizes = [8, 128], strides = [1, 1]} : vector<8x384xf32> to vector<8x128xf32>
    %56 = arith.addf %54, %55 : vector<8x128xf32>
    %57 = arith.negf %56 : vector<8x128xf32>
    %58 = math.exp %57 : vector<8x128xf32>
    %cst_18 = arith.constant 1.000000e+00 : f32
    %59 = vector.broadcast %cst_18 : f32 to vector<8x128xf32>
    %60 = arith.addf %59, %58 : vector<8x128xf32>
    %61 = arith.divf %59, %60 : vector<8x128xf32>
    %62 = vector.extract_strided_slice %51 {offsets = [0, 128], sizes = [8, 128], strides = [1, 1]} : vector<8x384xf32> to vector<8x128xf32>
    %63 = vector.extract_strided_slice %53 {offsets = [0, 128], sizes = [8, 128], strides = [1, 1]} : vector<8x384xf32> to vector<8x128xf32>
    %64 = arith.addf %62, %63 : vector<8x128xf32>
    %65 = arith.negf %64 : vector<8x128xf32>
    %66 = math.exp %65 : vector<8x128xf32>
    %cst_19 = arith.constant 1.000000e+00 : f32
    %67 = vector.broadcast %cst_19 : f32 to vector<8x128xf32>
    %68 = arith.addf %67, %66 : vector<8x128xf32>
    %69 = arith.divf %67, %68 : vector<8x128xf32>
    %70 = vector.extract_strided_slice %51 {offsets = [0, 256], sizes = [8, 128], strides = [1, 1]} : vector<8x384xf32> to vector<8x128xf32>
    %71 = vector.extract_strided_slice %53 {offsets = [0, 256], sizes = [8, 128], strides = [1, 1]} : vector<8x384xf32> to vector<8x128xf32>
    %72 = arith.addf %71, %11 : vector<8x128xf32>
    %73 = arith.mulf %61, %72 : vector<8x128xf32>
    %74 = arith.addf %70, %73 : vector<8x128xf32>
    %75 = math.tanh %74 : vector<8x128xf32>
    %cst_20 = arith.constant 1.000000e+00 : f32
    %76 = vector.broadcast %cst_20 : f32 to vector<8x128xf32>
    %77 = arith.subf %76, %69 : vector<8x128xf32>
    %78 = arith.mulf %77, %75 : vector<8x128xf32>
    %79 = arith.mulf %69, %45 : vector<8x128xf32>
    %80 = arith.addf %78, %79 : vector<8x128xf32>
    %81 = arith.index_cast %49 : i32 to index
    %c0_21 = arith.constant 0 : index
    %82 = vector.load %arg10[%81, %c0_21] : memref<64x128xf32, #tpu.memory_space<vmem>>, vector<8x128xf32>
    tpu.vector_store %arg10[%81, %c0_21], %80 {strides = array<i32>} : memref<64x128xf32, #tpu.memory_space<vmem>>, vector<8x128xf32>,
    %c2_i32 = arith.constant 2 : i32
    %c8_i32_22 = arith.constant 8 : i32
    %83 = arith.muli %c2_i32, %c8_i32_22 : i32
    %84 = tpu.assume_multiple %83, 8 : i32
    %85 = arith.index_cast %84 : i32 to index
    %c0_23 = arith.constant 0 : index
    %86 = vector.load %arg9[%85, %c0_23] : memref<64x384xf32, #tpu.memory_space<vmem>>, vector<8x384xf32>
    %87 = arith.truncf %80 : vector<8x128xf32> to vector<8x128xbf16>
    %cst_24 = arith.constant dense<0.000000e+00> : vector<8x384xf32>
    %88 = tpu.matmul %87, %7, %cst_24 {dimension_numbers = #tpu.dot_dimension_numbers<[1], [0], [0], [1], [0, 0, 1, 1], [], []>} : vector<8x128xbf16>, vector<128x384xbf16>, vector<8x384xf32> -> vector<8x384xf32>
    %89 = vector.extract_strided_slice %86 {offsets = [0, 0], sizes = [8, 128], strides = [1, 1]} : vector<8x384xf32> to vector<8x128xf32>
    %90 = vector.extract_strided_slice %88 {offsets = [0, 0], sizes = [8, 128], strides = [1, 1]} : vector<8x384xf32> to vector<8x128xf32>
    %91 = arith.addf %89, %90 : vector<8x128xf32>
    %92 = arith.negf %91 : vector<8x128xf32>
    %93 = math.exp %92 : vector<8x128xf32>
    %cst_25 = arith.constant 1.000000e+00 : f32
    %94 = vector.broadcast %cst_25 : f32 to vector<8x128xf32>
    %95 = arith.addf %94, %93 : vector<8x128xf32>
    %96 = arith.divf %94, %95 : vector<8x128xf32>
    %97 = vector.extract_strided_slice %86 {offsets = [0, 128], sizes = [8, 128], strides = [1, 1]} : vector<8x384xf32> to vector<8x128xf32>
    %98 = vector.extract_strided_slice %88 {offsets = [0, 128], sizes = [8, 128], strides = [1, 1]} : vector<8x384xf32> to vector<8x128xf32>
    %99 = arith.addf %97, %98 : vector<8x128xf32>
    %100 = arith.negf %99 : vector<8x128xf32>
    %101 = math.exp %100 : vector<8x128xf32>
    %cst_26 = arith.constant 1.000000e+00 : f32
    %102 = vector.broadcast %cst_26 : f32 to vector<8x128xf32>
    %103 = arith.addf %102, %101 : vector<8x128xf32>
    %104 = arith.divf %102, %103 : vector<8x128xf32>
    %105 = vector.extract_strided_slice %86 {offsets = [0, 256], sizes = [8, 128], strides = [1, 1]} : vector<8x384xf32> to vector<8x128xf32>
    %106 = vector.extract_strided_slice %88 {offsets = [0, 256], sizes = [8, 128], strides = [1, 1]} : vector<8x384xf32> to vector<8x128xf32>
    %107 = arith.addf %106, %11 : vector<8x128xf32>
    %108 = arith.mulf %96, %107 : vector<8x128xf32>
    %109 = arith.addf %105, %108 : vector<8x128xf32>
    %110 = math.tanh %109 : vector<8x128xf32>
    %cst_27 = arith.constant 1.000000e+00 : f32
    %111 = vector.broadcast %cst_27 : f32 to vector<8x128xf32>
    %112 = arith.subf %111, %104 : vector<8x128xf32>
    %113 = arith.mulf %112, %110 : vector<8x128xf32>
    %114 = arith.mulf %104, %80 : vector<8x128xf32>
    %115 = arith.addf %113, %114 : vector<8x128xf32>
    %116 = arith.index_cast %84 : i32 to index
    %c0_28 = arith.constant 0 : index
    %117 = vector.load %arg10[%116, %c0_28] : memref<64x128xf32, #tpu.memory_space<vmem>>, vector<8x128xf32>
    tpu.vector_store %arg10[%116, %c0_28], %115 {strides = array<i32>} : memref<64x128xf32, #tpu.memory_space<vmem>>, vector<8x128xf32>,
    %c3_i32 = arith.constant 3 : i32
    %c8_i32_29 = arith.constant 8 : i32
    %118 = arith.muli %c3_i32, %c8_i32_29 : i32
    %119 = tpu.assume_multiple %118, 8 : i32
    %120 = arith.index_cast %119 : i32 to index
    %c0_30 = arith.constant 0 : index
    %121 = vector.load %arg9[%120, %c0_30] : memref<64x384xf32, #tpu.memory_space<vmem>>, vector<8x384xf32>
    %122 = arith.truncf %115 : vector<8x128xf32> to vector<8x128xbf16>
    %cst_31 = arith.constant dense<0.000000e+00> : vector<8x384xf32>
    %123 = tpu.matmul %122, %7, %cst_31 {dimension_numbers = #tpu.dot_dimension_numbers<[1], [0], [0], [1], [0, 0, 1, 1], [], []>} : vector<8x128xbf16>, vector<128x384xbf16>, vector<8x384xf32> -> vector<8x384xf32>
    %124 = vector.extract_strided_slice %121 {offsets = [0, 0], sizes = [8, 128], strides = [1, 1]} : vector<8x384xf32> to vector<8x128xf32>
    %125 = vector.extract_strided_slice %123 {offsets = [0, 0], sizes = [8, 128], strides = [1, 1]} : vector<8x384xf32> to vector<8x128xf32>
    %126 = arith.addf %124, %125 : vector<8x128xf32>
    %127 = arith.negf %126 : vector<8x128xf32>
    %128 = math.exp %127 : vector<8x128xf32>
    %cst_32 = arith.constant 1.000000e+00 : f32
    %129 = vector.broadcast %cst_32 : f32 to vector<8x128xf32>
    %130 = arith.addf %129, %128 : vector<8x128xf32>
    %131 = arith.divf %129, %130 : vector<8x128xf32>
    %132 = vector.extract_strided_slice %121 {offsets = [0, 128], sizes = [8, 128], strides = [1, 1]} : vector<8x384xf32> to vector<8x128xf32>
    %133 = vector.extract_strided_slice %123 {offsets = [0, 128], sizes = [8, 128], strides = [1, 1]} : vector<8x384xf32> to vector<8x128xf32>
    %134 = arith.addf %132, %133 : vector<8x128xf32>
    %135 = arith.negf %134 : vector<8x128xf32>
    %136 = math.exp %135 : vector<8x128xf32>
    %cst_33 = arith.constant 1.000000e+00 : f32
    %137 = vector.broadcast %cst_33 : f32 to vector<8x128xf32>
    %138 = arith.addf %137, %136 : vector<8x128xf32>
    %139 = arith.divf %137, %138 : vector<8x128xf32>
    %140 = vector.extract_strided_slice %121 {offsets = [0, 256], sizes = [8, 128], strides = [1, 1]} : vector<8x384xf32> to vector<8x128xf32>
    %141 = vector.extract_strided_slice %123 {offsets = [0, 256], sizes = [8, 128], strides = [1, 1]} : vector<8x384xf32> to vector<8x128xf32>
    %142 = arith.addf %141, %11 : vector<8x128xf32>
    %143 = arith.mulf %131, %142 : vector<8x128xf32>
    %144 = arith.addf %140, %143 : vector<8x128xf32>
    %145 = math.tanh %144 : vector<8x128xf32>
    %cst_34 = arith.constant 1.000000e+00 : f32
    %146 = vector.broadcast %cst_34 : f32 to vector<8x128xf32>
    %147 = arith.subf %146, %139 : vector<8x128xf32>
    %148 = arith.mulf %147, %145 : vector<8x128xf32>
    %149 = arith.mulf %139, %115 : vector<8x128xf32>
    %150 = arith.addf %148, %149 : vector<8x128xf32>
    %151 = arith.index_cast %119 : i32 to index
    %c0_35 = arith.constant 0 : index
    %152 = vector.load %arg10[%151, %c0_35] : memref<64x128xf32, #tpu.memory_space<vmem>>, vector<8x128xf32>
    tpu.vector_store %arg10[%151, %c0_35], %150 {strides = array<i32>} : memref<64x128xf32, #tpu.memory_space<vmem>>, vector<8x128xf32>,
    %c4_i32 = arith.constant 4 : i32
    %c8_i32_36 = arith.constant 8 : i32
    %153 = arith.muli %c4_i32, %c8_i32_36 : i32
    %154 = tpu.assume_multiple %153, 8 : i32
    %155 = arith.index_cast %154 : i32 to index
    %c0_37 = arith.constant 0 : index
    %156 = vector.load %arg9[%155, %c0_37] : memref<64x384xf32, #tpu.memory_space<vmem>>, vector<8x384xf32>
    %157 = arith.truncf %150 : vector<8x128xf32> to vector<8x128xbf16>
    %cst_38 = arith.constant dense<0.000000e+00> : vector<8x384xf32>
    %158 = tpu.matmul %157, %7, %cst_38 {dimension_numbers = #tpu.dot_dimension_numbers<[1], [0], [0], [1], [0, 0, 1, 1], [], []>} : vector<8x128xbf16>, vector<128x384xbf16>, vector<8x384xf32> -> vector<8x384xf32>
    %159 = vector.extract_strided_slice %156 {offsets = [0, 0], sizes = [8, 128], strides = [1, 1]} : vector<8x384xf32> to vector<8x128xf32>
    %160 = vector.extract_strided_slice %158 {offsets = [0, 0], sizes = [8, 128], strides = [1, 1]} : vector<8x384xf32> to vector<8x128xf32>
    %161 = arith.addf %159, %160 : vector<8x128xf32>
    %162 = arith.negf %161 : vector<8x128xf32>
    %163 = math.exp %162 : vector<8x128xf32>
    %cst_39 = arith.constant 1.000000e+00 : f32
    %164 = vector.broadcast %cst_39 : f32 to vector<8x128xf32>
    %165 = arith.addf %164, %163 : vector<8x128xf32>
    %166 = arith.divf %164, %165 : vector<8x128xf32>
    %167 = vector.extract_strided_slice %156 {offsets = [0, 128], sizes = [8, 128], strides = [1, 1]} : vector<8x384xf32> to vector<8x128xf32>
    %168 = vector.extract_strided_slice %158 {offsets = [0, 128], sizes = [8, 128], strides = [1, 1]} : vector<8x384xf32> to vector<8x128xf32>
    %169 = arith.addf %167, %168 : vector<8x128xf32>
    %170 = arith.negf %169 : vector<8x128xf32>
    %171 = math.exp %170 : vector<8x128xf32>
    %cst_40 = arith.constant 1.000000e+00 : f32
    %172 = vector.broadcast %cst_40 : f32 to vector<8x128xf32>
    %173 = arith.addf %172, %171 : vector<8x128xf32>
    %174 = arith.divf %172, %173 : vector<8x128xf32>
    %175 = vector.extract_strided_slice %156 {offsets = [0, 256], sizes = [8, 128], strides = [1, 1]} : vector<8x384xf32> to vector<8x128xf32>
    %176 = vector.extract_strided_slice %158 {offsets = [0, 256], sizes = [8, 128], strides = [1, 1]} : vector<8x384xf32> to vector<8x128xf32>
    %177 = arith.addf %176, %11 : vector<8x128xf32>
    %178 = arith.mulf %166, %177 : vector<8x128xf32>
    %179 = arith.addf %175, %178 : vector<8x128xf32>
    %180 = math.tanh %179 : vector<8x128xf32>
    %cst_41 = arith.constant 1.000000e+00 : f32
    %181 = vector.broadcast %cst_41 : f32 to vector<8x128xf32>
    %182 = arith.subf %181, %174 : vector<8x128xf32>
    %183 = arith.mulf %182, %180 : vector<8x128xf32>
    %184 = arith.mulf %174, %150 : vector<8x128xf32>
    %185 = arith.addf %183, %184 : vector<8x128xf32>
    %186 = arith.index_cast %154 : i32 to index
    %c0_42 = arith.constant 0 : index
    %187 = vector.load %arg10[%186, %c0_42] : memref<64x128xf32, #tpu.memory_space<vmem>>, vector<8x128xf32>
    tpu.vector_store %arg10[%186, %c0_42], %185 {strides = array<i32>} : memref<64x128xf32, #tpu.memory_space<vmem>>, vector<8x128xf32>,
    %c5_i32 = arith.constant 5 : i32
    %c8_i32_43 = arith.constant 8 : i32
    %188 = arith.muli %c5_i32, %c8_i32_43 : i32
    %189 = tpu.assume_multiple %188, 8 : i32
    %190 = arith.index_cast %189 : i32 to index
    %c0_44 = arith.constant 0 : index
    %191 = vector.load %arg9[%190, %c0_44] : memref<64x384xf32, #tpu.memory_space<vmem>>, vector<8x384xf32>
    %192 = arith.truncf %185 : vector<8x128xf32> to vector<8x128xbf16>
    %cst_45 = arith.constant dense<0.000000e+00> : vector<8x384xf32>
    %193 = tpu.matmul %192, %7, %cst_45 {dimension_numbers = #tpu.dot_dimension_numbers<[1], [0], [0], [1], [0, 0, 1, 1], [], []>} : vector<8x128xbf16>, vector<128x384xbf16>, vector<8x384xf32> -> vector<8x384xf32>
    %194 = vector.extract_strided_slice %191 {offsets = [0, 0], sizes = [8, 128], strides = [1, 1]} : vector<8x384xf32> to vector<8x128xf32>
    %195 = vector.extract_strided_slice %193 {offsets = [0, 0], sizes = [8, 128], strides = [1, 1]} : vector<8x384xf32> to vector<8x128xf32>
    %196 = arith.addf %194, %195 : vector<8x128xf32>
    %197 = arith.negf %196 : vector<8x128xf32>
    %198 = math.exp %197 : vector<8x128xf32>
    %cst_46 = arith.constant 1.000000e+00 : f32
    %199 = vector.broadcast %cst_46 : f32 to vector<8x128xf32>
    %200 = arith.addf %199, %198 : vector<8x128xf32>
    %201 = arith.divf %199, %200 : vector<8x128xf32>
    %202 = vector.extract_strided_slice %191 {offsets = [0, 128], sizes = [8, 128], strides = [1, 1]} : vector<8x384xf32> to vector<8x128xf32>
    %203 = vector.extract_strided_slice %193 {offsets = [0, 128], sizes = [8, 128], strides = [1, 1]} : vector<8x384xf32> to vector<8x128xf32>
    %204 = arith.addf %202, %203 : vector<8x128xf32>
    %205 = arith.negf %204 : vector<8x128xf32>
    %206 = math.exp %205 : vector<8x128xf32>
    %cst_47 = arith.constant 1.000000e+00 : f32
    %207 = vector.broadcast %cst_47 : f32 to vector<8x128xf32>
    %208 = arith.addf %207, %206 : vector<8x128xf32>
    %209 = arith.divf %207, %208 : vector<8x128xf32>
    %210 = vector.extract_strided_slice %191 {offsets = [0, 256], sizes = [8, 128], strides = [1, 1]} : vector<8x384xf32> to vector<8x128xf32>
    %211 = vector.extract_strided_slice %193 {offsets = [0, 256], sizes = [8, 128], strides = [1, 1]} : vector<8x384xf32> to vector<8x128xf32>
    %212 = arith.addf %211, %11 : vector<8x128xf32>
    %213 = arith.mulf %201, %212 : vector<8x128xf32>
    %214 = arith.addf %210, %213 : vector<8x128xf32>
    %215 = math.tanh %214 : vector<8x128xf32>
    %cst_48 = arith.constant 1.000000e+00 : f32
    %216 = vector.broadcast %cst_48 : f32 to vector<8x128xf32>
    %217 = arith.subf %216, %209 : vector<8x128xf32>
    %218 = arith.mulf %217, %215 : vector<8x128xf32>
    %219 = arith.mulf %209, %185 : vector<8x128xf32>
    %220 = arith.addf %218, %219 : vector<8x128xf32>
    %221 = arith.index_cast %189 : i32 to index
    %c0_49 = arith.constant 0 : index
    %222 = vector.load %arg10[%221, %c0_49] : memref<64x128xf32, #tpu.memory_space<vmem>>, vector<8x128xf32>
    tpu.vector_store %arg10[%221, %c0_49], %220 {strides = array<i32>} : memref<64x128xf32, #tpu.memory_space<vmem>>, vector<8x128xf32>,
    %c6_i32 = arith.constant 6 : i32
    %c8_i32_50 = arith.constant 8 : i32
    %223 = arith.muli %c6_i32, %c8_i32_50 : i32
    %224 = tpu.assume_multiple %223, 8 : i32
    %225 = arith.index_cast %224 : i32 to index
    %c0_51 = arith.constant 0 : index
    %226 = vector.load %arg9[%225, %c0_51] : memref<64x384xf32, #tpu.memory_space<vmem>>, vector<8x384xf32>
    %227 = arith.truncf %220 : vector<8x128xf32> to vector<8x128xbf16>
    %cst_52 = arith.constant dense<0.000000e+00> : vector<8x384xf32>
    %228 = tpu.matmul %227, %7, %cst_52 {dimension_numbers = #tpu.dot_dimension_numbers<[1], [0], [0], [1], [0, 0, 1, 1], [], []>} : vector<8x128xbf16>, vector<128x384xbf16>, vector<8x384xf32> -> vector<8x384xf32>
    %229 = vector.extract_strided_slice %226 {offsets = [0, 0], sizes = [8, 128], strides = [1, 1]} : vector<8x384xf32> to vector<8x128xf32>
    %230 = vector.extract_strided_slice %228 {offsets = [0, 0], sizes = [8, 128], strides = [1, 1]} : vector<8x384xf32> to vector<8x128xf32>
    %231 = arith.addf %229, %230 : vector<8x128xf32>
    %232 = arith.negf %231 : vector<8x128xf32>
    %233 = math.exp %232 : vector<8x128xf32>
    %cst_53 = arith.constant 1.000000e+00 : f32
    %234 = vector.broadcast %cst_53 : f32 to vector<8x128xf32>
    %235 = arith.addf %234, %233 : vector<8x128xf32>
    %236 = arith.divf %234, %235 : vector<8x128xf32>
    %237 = vector.extract_strided_slice %226 {offsets = [0, 128], sizes = [8, 128], strides = [1, 1]} : vector<8x384xf32> to vector<8x128xf32>
    %238 = vector.extract_strided_slice %228 {offsets = [0, 128], sizes = [8, 128], strides = [1, 1]} : vector<8x384xf32> to vector<8x128xf32>
    %239 = arith.addf %237, %238 : vector<8x128xf32>
    %240 = arith.negf %239 : vector<8x128xf32>
    %241 = math.exp %240 : vector<8x128xf32>
    %cst_54 = arith.constant 1.000000e+00 : f32
    %242 = vector.broadcast %cst_54 : f32 to vector<8x128xf32>
    %243 = arith.addf %242, %241 : vector<8x128xf32>
    %244 = arith.divf %242, %243 : vector<8x128xf32>
    %245 = vector.extract_strided_slice %226 {offsets = [0, 256], sizes = [8, 128], strides = [1, 1]} : vector<8x384xf32> to vector<8x128xf32>
    %246 = vector.extract_strided_slice %228 {offsets = [0, 256], sizes = [8, 128], strides = [1, 1]} : vector<8x384xf32> to vector<8x128xf32>
    %247 = arith.addf %246, %11 : vector<8x128xf32>
    %248 = arith.mulf %236, %247 : vector<8x128xf32>
    %249 = arith.addf %245, %248 : vector<8x128xf32>
    %250 = math.tanh %249 : vector<8x128xf32>
    %cst_55 = arith.constant 1.000000e+00 : f32
    %251 = vector.broadcast %cst_55 : f32 to vector<8x128xf32>
    %252 = arith.subf %251, %244 : vector<8x128xf32>
    %253 = arith.mulf %252, %250 : vector<8x128xf32>
    %254 = arith.mulf %244, %220 : vector<8x128xf32>
    %255 = arith.addf %253, %254 : vector<8x128xf32>
    %256 = arith.index_cast %224 : i32 to index
    %c0_56 = arith.constant 0 : index
    %257 = vector.load %arg10[%256, %c0_56] : memref<64x128xf32, #tpu.memory_space<vmem>>, vector<8x128xf32>
    tpu.vector_store %arg10[%256, %c0_56], %255 {strides = array<i32>} : memref<64x128xf32, #tpu.memory_space<vmem>>, vector<8x128xf32>,
    %c7_i32 = arith.constant 7 : i32
    %c8_i32_57 = arith.constant 8 : i32
    %258 = arith.muli %c7_i32, %c8_i32_57 : i32
    %259 = tpu.assume_multiple %258, 8 : i32
    %260 = arith.index_cast %259 : i32 to index
    %c0_58 = arith.constant 0 : index
    %261 = vector.load %arg9[%260, %c0_58] : memref<64x384xf32, #tpu.memory_space<vmem>>, vector<8x384xf32>
    %262 = arith.truncf %255 : vector<8x128xf32> to vector<8x128xbf16>
    %cst_59 = arith.constant dense<0.000000e+00> : vector<8x384xf32>
    %263 = tpu.matmul %262, %7, %cst_59 {dimension_numbers = #tpu.dot_dimension_numbers<[1], [0], [0], [1], [0, 0, 1, 1], [], []>} : vector<8x128xbf16>, vector<128x384xbf16>, vector<8x384xf32> -> vector<8x384xf32>
    %264 = vector.extract_strided_slice %261 {offsets = [0, 0], sizes = [8, 128], strides = [1, 1]} : vector<8x384xf32> to vector<8x128xf32>
    %265 = vector.extract_strided_slice %263 {offsets = [0, 0], sizes = [8, 128], strides = [1, 1]} : vector<8x384xf32> to vector<8x128xf32>
    %266 = arith.addf %264, %265 : vector<8x128xf32>
    %267 = arith.negf %266 : vector<8x128xf32>
    %268 = math.exp %267 : vector<8x128xf32>
    %cst_60 = arith.constant 1.000000e+00 : f32
    %269 = vector.broadcast %cst_60 : f32 to vector<8x128xf32>
    %270 = arith.addf %269, %268 : vector<8x128xf32>
    %271 = arith.divf %269, %270 : vector<8x128xf32>
    %272 = vector.extract_strided_slice %261 {offsets = [0, 128], sizes = [8, 128], strides = [1, 1]} : vector<8x384xf32> to vector<8x128xf32>
    %273 = vector.extract_strided_slice %263 {offsets = [0, 128], sizes = [8, 128], strides = [1, 1]} : vector<8x384xf32> to vector<8x128xf32>
    %274 = arith.addf %272, %273 : vector<8x128xf32>
    %275 = arith.negf %274 : vector<8x128xf32>
    %276 = math.exp %275 : vector<8x128xf32>
    %cst_61 = arith.constant 1.000000e+00 : f32
    %277 = vector.broadcast %cst_61 : f32 to vector<8x128xf32>
    %278 = arith.addf %277, %276 : vector<8x128xf32>
    %279 = arith.divf %277, %278 : vector<8x128xf32>
    %280 = vector.extract_strided_slice %261 {offsets = [0, 256], sizes = [8, 128], strides = [1, 1]} : vector<8x384xf32> to vector<8x128xf32>
    %281 = vector.extract_strided_slice %263 {offsets = [0, 256], sizes = [8, 128], strides = [1, 1]} : vector<8x384xf32> to vector<8x128xf32>
    %282 = arith.addf %281, %11 : vector<8x128xf32>
    %283 = arith.mulf %271, %282 : vector<8x128xf32>
    %284 = arith.addf %280, %283 : vector<8x128xf32>
    %285 = math.tanh %284 : vector<8x128xf32>
    %cst_62 = arith.constant 1.000000e+00 : f32
    %286 = vector.broadcast %cst_62 : f32 to vector<8x128xf32>
    %287 = arith.subf %286, %279 : vector<8x128xf32>
    %288 = arith.mulf %287, %285 : vector<8x128xf32>
    %289 = arith.mulf %279, %255 : vector<8x128xf32>
    %290 = arith.addf %288, %289 : vector<8x128xf32>
    %291 = arith.index_cast %259 : i32 to index
    %c0_63 = arith.constant 0 : index
    %292 = vector.load %arg10[%291, %c0_63] : memref<64x128xf32, #tpu.memory_space<vmem>>, vector<8x128xf32>
    tpu.vector_store %arg10[%291, %c0_63], %290 {strides = array<i32>} : memref<64x128xf32, #tpu.memory_space<vmem>>, vector<8x128xf32>,
    %c8_i32_64 = arith.constant 8 : i32
    %c0_65 = arith.constant 0 : index
    %c0_66 = arith.constant 0 : index
    %293 = vector.load %arg8[%c0_65, %c0_66] : memref<8x128xf32, #tpu.memory_space<vmem>>, vector<8x128xf32>
    tpu.vector_store %arg8[%c0_65, %c0_66], %290 {strides = array<i32>} : memref<8x128xf32, #tpu.memory_space<vmem>>, vector<8x128xf32>,
    return
  }
  func.func @transform_0(%arg0: i32) -> (i32, i32) {
    %c0_i32 = arith.constant 0 : i32
    %c0_i32_0 = arith.constant 0 : i32
    %c0_i32_1 = arith.constant 0 : i32
    return %c0_i32, %c0_i32_0 : i32, i32
  }
  func.func @transform_1(%arg0: i32) -> (i32, i32) {
    %c0_i32 = arith.constant 0 : i32
    %c0_i32_0 = arith.constant 0 : i32
    %c0_i32_1 = arith.constant 0 : i32
    return %c0_i32, %c0_i32_0 : i32, i32
  }
  func.func @transform_2(%arg0: i32) -> (i32, i32) {
    %c0_i32 = arith.constant 0 : i32
    %c0_i32_0 = arith.constant 0 : i32
    %c0_i32_1 = arith.constant 0 : i32
    return %c0_i32, %c0_i32_0 : i32, i32
  }
  func.func @transform_3(%arg0: i32) -> (i32, i32, i32) {
    %c0_i32 = arith.constant 0 : i32
    %c0_i32_0 = arith.constant 0 : i32
    %c0_i32_1 = arith.constant 0 : i32
    return %arg0, %c0_i32, %c0_i32_0 : i32, i32, i32
  }
  func.func @transform_4(%arg0: i32) -> (i32, i32, i32) {
    %c0_i32 = arith.constant 0 : i32
    %c0_i32_0 = arith.constant 0 : i32
    %c0_i32_1 = arith.constant 0 : i32
    return %arg0, %c0_i32, %c0_i32_0 : i32, i32, i32
  }
  func.func @transform_5(%arg0: i32) -> (i32, i32, i32) {
    %c0_i32 = arith.constant 0 : i32
    %c0_i32_0 = arith.constant 0 : i32
    %c0_i32_1 = arith.constant 0 : i32
    return %arg0, %c0_i32, %c0_i32_0 : i32, i32, i32
  }
  func.func @transform_6(%arg0: i32) -> (i32, i32, i32) {
    %c0_i32 = arith.constant 0 : i32
    %c0_i32_0 = arith.constant 0 : i32
    %c0_i32_1 = arith.constant 0 : i32
    return %arg0, %c0_i32, %c0_i32_0 : i32, i32, i32
  }
  func.func @transform_7(%arg0: i32) -> (i32, i32) {
    %c0_i32 = arith.constant 0 : i32
    %c0_i32_0 = arith.constant 0 : i32
    return %c0_i32, %arg0 : i32, i32
  }
}

</mosaic_0001>

<bundles_post_ra>
// kernel: tpu_custom_call.1
= control target key start
LH: loop header
LB: loop body
LE: loop exit
PB: predicated region body
PF: predicated region fallthrough
CT: control target
= control target key end

     0   :  { %s4061_s0 = inlined_call_operand.hbm [shape: bf16[64,128], index: 0, kind: input, shape index: {}]   ;;  %s4062_s1 = inlined_call_operand.hbm [shape: bf16[128,384], index: 1, kind: input, shape index: {}]   ;;  %s4063_s2 = inlined_call_operand.vmem [shape: f32[1,384], index: 2, kind: input, shape index: {}]   ;;  %s4064_s3 = inlined_call_operand.hbm [shape: bf16[2,128,384], index: 3, kind: input, shape index: {}]   ;;  %s4065_s4 = inlined_call_operand.vmem [shape: f32[2,1,384], index: 4, kind: input, shape index: {}]   ;;  %s4066_s5 = inlined_call_operand.hbm [shape: bf16[2,128,384], index: 5, kind: input, shape index: {}]   ;;  %s4067_s6 = inlined_call_operand.vmem [shape: f32[2,1,128], index: 6, kind: input, shape index: {}]   ;;  %s4068_s7 = inlined_call_operand.hbm [shape: f32[8,256], index: 7, kind: output, shape index: {}]  }
   0x1   :  { %4078 = sst [smem:[#allocation19_spill]] %s4061_s0 }
   0x2   :  { %12 = vsyncpa [#allocation5], 0 }
   0x3   :  { %13 = vsyncpa [#allocation8], 0 }
   0x4   :  { %14 = vsyncpa [#allocation6], 0 }
   0x5   :  { %16 = vsyncpa [#allocation6 + $0x1], 0  ;;  %s3269_s24 = smov 0   ;;  %s3271_s25 = smov 0  }
   0x6   :  { %s3273_s26 = smov 0   ;;  %s3275_s27 = smov 0  }
   0x7 LB: > { %s3290_s28 = sadd.s32 4294967295, %s3213_s27   ;;  %s2336_s29 = sadd.s32 4294967294, %s3213_s27   ;;  %s3213_s27 = sphi %s3275_s27, %s4106_s27   ;;  %s3209_s26 = sphi %s3273_s26, %s4110_s26   ;;  %s3205_s25 = sphi %s3271_s25, %s4109_s25   ;;  %s3201_s24 = sphi %s3269_s24, %s4108_s24  }
   0x8   : > { %s3294_s30 = sadd.s32 1, %s3213_s27   ;;  %s92_s8 = sadd.s32 1, %s3209_s26 }
   0x9   : > { %4079 = sst [smem:[#allocation16_spill]] %s3294_s30  ;;  %s89_s9 = ssub.s32 %s3213_s27, %s3294_s30 }
   0xa   : > { %p99_p0 = scmp.ne.s32.totalorder %s3209_s26, %s3205_s25  ;;  %p90_p1 = scmp.eq.s32.totalorder %s89_s9, 0 }
   0xb   : > { %p100_p2 = scmp.eq.s32.totalorder %s3213_s27, 0  ;;  %p105_p3 = scmp.ne.s32.totalorder %s3205_s25, %s3201_s24 }
   0xc   : > { %p4069_p4 = scmp.eq.s32.totalorder %s3290_s28, 0  ;;  %p207_p7 = scmp.eq.s32.totalorder %s3290_s28, 1 }
   0xd   : > { %s3306_s10 = scalar_select %p90_p1, %s3209_s26, %s92_s8  }
   0xe   : > { %p3308_p5 = por %p100_p2, %p99_p0  ;;  %p3314_p6 = por %p4069_p4, %p105_p3 }
   0xf   : > { %4080 = sst [smem:[#allocation17_spill]] %s3306_s10  ;;  %p213_p8 = scmp.eq.s32.totalorder %s2336_s29, 1 }
  0x10   : > { %s4081_s11 = scalar_select %p3308_p5, 1, 0 }
  0x11   : > { %s4082_s12 = scalar_select %p3314_p6, 1, 0 }
  0x12   : > { %p2337_p9 = scmp.ge.s32.totalorder %s3213_s27, 1  ;;  %p220_p10 = scmp.lt.s32.totalorder %s3213_s27, 3 }
  0x13   : > { %p3321_p11 = por %p207_p7, %p99_p0  ;;  %p3325_p12 = por %p213_p8, %p105_p3 }
  0x14   : > { %p3329_p13 = pnand %p2337_p9, %p220_p10  ;;  %s3215_s16 = smov [#allocation4]  }
  0x15   : > { %s4083_s13 = scalar_select %p3321_p11, 1, 0 }
  0x16   : > { %s4084_s14 = scalar_select %p3325_p12, 1, 0 }
  0x17   : > { %s4086_s15 = scalar_select %p3329_p13, 1, 0 }
  0x18   : > { %4085 = sst [smem:[#allocation18_spill]] %s4084_s14  ;;  %p2770_p2 = pneg %p3329_p13 }
  0x19   : > { %s232_s17 = sshll.u32 %s3215_s16, 4  ;;  %s4088_s0 = sld [smem:[#allocation19_spill]]  ;;  %s233_s17 = int_to_ptr.vmem [resolvable:$true] %s232_s17 }
  0x1a   : > { %p3338_p0 = pnand %p2770_p2, %p4069_p4 }
  0x1c   : > { %p4076_p9 = pneg %p3338_p0 }
  0x1f   : > { %s3023_s21 = scalar_lea.hbm %s4088_s0, 512 }
  0x20   : > { %p3024_p8 = scmp.ne.s32.totalorder %s4088_s0, %s3023_s21  ;;  %p3030_p1 = scmp.lt.u32.totalorder %s3023_s21, %s4088_s0 }
  0x22   : > { %p3026_p10 = pnand %p4076_p9, %p3024_p8 }
  0x24   : > { %p3027_p2 = pneg %p3026_p10 }
  0x26   : > { %p3032_p3 = pnand %p3030_p1, %p3027_p2 }
  0x28   : > { %3035 = shalt.err (!%p3032_p3)
}
  0x29   : > { %s3036_s9 = scalar_lea.vmem %s233_s17, 512  ;;  %p3044_p11 = scmp.lt.s32.totalorder %s233_s17, %s233_s17 }
  0x2a   : > { %p3037_p4 = scmp.ne.s32.totalorder %s233_s17, %s3036_s9  ;;  %p3045_p6 = scmp.lt.s32.totalorder %s3036_s9, %s3036_s9 }
  0x2c   : > { %p3039_p7 = pnand %p3037_p4, %p4076_p9  ;;  %p3046_p13 = por %p3045_p6, %p3044_p11 }
  0x2e   : > { %p3040_p12 = pneg %p3039_p7 }
  0x30   : > { %p3047_p5 = pnand %p3046_p13, %p3040_p12 }
  0x32   : > { %3050 = shalt.err (!%p3047_p5)
}
  0x33   : > { %s3216_s16 = smov 64   ;;  %s3217_s19 = smov 4  }
  0x34   : > { %2773 = dma.hbm_to_vmem [thread:$0]  (!%p3338_p0), %s4088_s0, 512, %s233_s17, [#allocation5], %s3216_s16, %s3216_s16, %s3217_s19  }
  0x35   : > { %p4089_p4 = scmp.ne.s32.totalorder %s4081_s11, 0  ;;  %p4090_p1 = scmp.lt.s32.totalorder %s3213_s27, 2 }
  0x36   : > { %s262_s23 = sand.u32 1, %s3213_s27   ;;  %s264_s29 = sand.u32 1, %s3209_s26  }
  0x37   : > { %p3370_p3 = pnand %p4090_p1, %p4089_p4  ;;  %s3376_s8 = smul.u32 192, %s264_s29 }
  0x38   : > { %s4077_s9 = smul.u32 3072, %s3213_s27  ;;  %s3218_s10 = smov [#allocation7]  }
  0x39   : > { %s245_s30 = sshll.u32 %s3218_s10, 4  ;;  %s266_s17 = scalar_lea.vmem [#allocation9], %s3376_s8  ;;  %s3389_s30 = int_to_ptr.vmem [resolvable:$true] %s245_s30 }
  0x3a   : > { %s3384_s11 = scalar_lea.hbm %s4064_s3, %s4077_s9  ;;  %s273_s16 = sshll.u32 %s266_s17, 4  ;;  %s3387_s16 = int_to_ptr.vmem [resolvable:$true] %s273_s16 }
  0x3b   : > { %s3391_s19 = scalar_lea.sflag [#allocation5], %s262_s23  ;;  %s3051_s21 = scalar_lea.hbm %s3384_s11, 3072 }
  0x3c   : > { %p3052_p5 = scmp.ne.s32.totalorder %s3384_s11, %s3051_s21  ;;  %p3053_p6 = pneg %p3370_p3 }
  0x3d   : > { %s3056_s29 = scalar_lea.hbm %s4064_s3, 6144  ;;  %p3057_p13 = scmp.lt.u32.totalorder %s3384_s11, %s4064_s3 }
  0x3e   : > { %p3054_p11 = pnand %p3053_p6, %p3052_p5  ;;  %p3058_p7 = scmp.lt.u32.totalorder %s3056_s29, %s3051_s21 }
  0x3f   : > { %p3060_p10 = scmp.lt.u32.totalorder %s3051_s21, %s3384_s11 }
  0x40   : > { %p3055_p12 = pneg %p3054_p11  ;;  %p3059_p8 = por %p3058_p7, %p3057_p13 }
  0x42   : > { %p3061_p2 = por %p3060_p10, %p3059_p8 }
  0x44   : > { %p3062_p4 = pnand %p3061_p2, %p3055_p12 }
  0x46   : > { %3065 = shalt.err (!%p3062_p4)
}
  0x47   : > { %s3066_s23 = scalar_lea.vmem %s3387_s16, 3072  ;;  %s3219_s10 = smov [#allocation9]  }
  0x48   : > { %p3067_p1 = scmp.ne.s32.totalorder %s3387_s16, %s3066_s23  ;;  %s3071_s14 = sshll.u32 %s3219_s10, 4  ;;  %s3072_s14 = int_to_ptr.vmem [resolvable:$false] %s3071_s14 }
  0x49   : > { %s3073_s20 = scalar_lea.vmem %s3072_s14, 6144  ;;  %p3074_p9 = scmp.lt.s32.totalorder %s3387_s16, %s3072_s14 }
  0x4a   : > { %p3069_p5 = pnand %p3067_p1, %p3053_p6  ;;  %p3075_p13 = scmp.lt.s32.totalorder %s3073_s20, %s3066_s23 }
  0x4c   : > { %p3070_p11 = pneg %p3069_p5  ;;  %p3076_p7 = por %p3075_p13, %p3074_p9 }
  0x4e   : > { %p3077_p8 = pnand %p3076_p7, %p3070_p11 }
  0x50   : > { %3080 = shalt.err (!%p3077_p8)
}
  0x51   : > { %s3220_s21 = smov 192   ;;  %s3221_s29 = smov 12  }
  0x52   : > { %2780 = dma.hbm_to_vmem [thread:$0]  (!%p3370_p3), %s3384_s11, 3072, %s3387_s16, %s3391_s19, %s3220_s21, %s3220_s21, %s3221_s29  }
  0x53   : > { %s3081_s14 = scalar_lea.hbm %s4062_s1, 3072  ;;  %p4092_p12 = pneg %p3338_p0 }
  0x54   : > { %p3082_p9 = scmp.ne.s32.totalorder %s4062_s1, %s3081_s14  ;;  %p3088_p4 = scmp.lt.u32.totalorder %s3081_s14, %s4062_s1 }
  0x56   : > { %p3084_p10 = pnand %p3082_p9, %p4092_p12 }
  0x58   : > { %p3085_p2 = pneg %p3084_p10 }
  0x5a   : > { %p3090_p1 = pnand %p3088_p4, %p3085_p2 }
  0x5c   : > { %3093 = shalt.err (!%p3090_p1)
}
  0x5d   : > { %s3094_s11 = scalar_lea.vmem %s3389_s30, 3072  ;;  %p4093_p11 = pmov %p4092_p12 }
  0x5e   : > { %p3095_p5 = scmp.ne.s32.totalorder %s3389_s30, %s3094_s11  ;;  %p3102_p8 = scmp.lt.s32.totalorder %s3389_s30, %s3389_s30 }
  0x5f   : > { %p3103_p9 = scmp.lt.s32.totalorder %s3094_s11, %s3094_s11 }
  0x60   : > { %p3097_p13 = pnand %p3095_p5, %p4093_p11 }
  0x61   : > { %p3104_p12 = por %p3103_p9, %p3102_p8 }
  0x62   : > { %p3098_p7 = pneg %p3097_p13 }
  0x64   : > { %p3105_p10 = pnand %p3104_p12, %p3098_p7 }
  0x66   : > { %3108 = shalt.err (!%p3105_p10)
}
  0x67   : > { %2776 = dma.hbm_to_vmem [thread:$0]  (!%p3338_p0), %s4062_s1, 3072, %s3389_s30, [#allocation8], %s3220_s21, %s3220_s21, %s3221_s29  }
  0x68   : > { %s4094_s16 = smul.u32 3072, %s3213_s27  ;;  %s294_s18 = scalar_lea.vmem [#allocation10], %s3376_s8 }
  0x69   : > { %s301_s23 = sshll.u32 %s294_s18, 4  ;;  %s3114_s0 = scalar_lea.hbm %s4066_s5, 6144  ;;  %s3458_s23 = int_to_ptr.vmem [resolvable:$true] %s301_s23 }
  0x6a   : > { %s3455_s14 = scalar_lea.hbm %s4066_s5, %s4094_s16 }
  0x6b   : > { %s3109_s20 = scalar_lea.hbm %s3455_s14, 3072  ;;  %p3115_p1 = scmp.lt.u32.totalorder %s3455_s14, %s4066_s5 }
  0x6c   : > { %p3110_p2 = scmp.ne.s32.totalorder %s3455_s14, %s3109_s20  ;;  %p3116_p5 = scmp.lt.u32.totalorder %s3114_s0, %s3109_s20 }
  0x6d   : > { %p3118_p13 = scmp.lt.u32.totalorder %s3109_s20, %s3455_s14 }
  0x6e   : > { %p3112_p4 = pnand %p3110_p2, %p3053_p6  ;;  %p3117_p11 = por %p3116_p5, %p3115_p1 }
  0x70   : > { %p3113_p0 = pneg %p3112_p4  ;;  %p3119_p7 = por %p3118_p13, %p3117_p11 }
  0x72   : > { %p3120_p8 = pnand %p3119_p7, %p3113_p0 }
  0x74   : > { %3123 = shalt.err (!%p3120_p8)
}
  0x75   : > { %s3124_s8 = scalar_lea.vmem %s3458_s23, 3072  ;;  %s3222_s17 = smov [#allocation10]  }
  0x76   : > { %p3125_p9 = scmp.ne.s32.totalorder %s3458_s23, %s3124_s8  ;;  %s3129_s10 = sshll.u32 %s3222_s17, 4  ;;  %s3130_s10 = int_to_ptr.vmem [resolvable:$false] %s3129_s10 }
  0x77   : > { %s3131_s18 = scalar_lea.vmem %s3130_s10, 6144  ;;  %p3132_p2 = scmp.lt.s32.totalorder %s3458_s23, %s3130_s10 }
  0x78   : > { %p3127_p12 = pnand %p3125_p9, %p3053_p6  ;;  %p3133_p4 = scmp.lt.s32.totalorder %s3131_s18, %s3124_s8 }
  0x7a   : > { %p3128_p10 = pneg %p3127_p12  ;;  %p3134_p1 = por %p3133_p4, %p3132_p2 }
  0x7c   : > { %p3135_p5 = pnand %p3134_p1, %p3128_p10 }
  0x7e   : > { %3138 = shalt.err (!%p3135_p5)
}
  0x7f   : > { %2783 = dma.hbm_to_vmem [thread:$0]  (!%p3370_p3), %s3455_s14, 3072, %s3458_s23, %s3391_s19, %s3220_s21, %s3220_s21, %s3221_s29  }
  0x80   : > { %p4095_p6 = scmp.ne.s32.totalorder %s4086_s15, 0 }
  0x81   : > { %p4096_p0 = scmp.eq.s32.totalorder (!%p4095_p6), %s3290_s28, 0 }
  0x82   : > { %319 = sbr.rel (%p4095_p6) target bundleno = 2835 (0xb13), region = 48 }
  0x89   : > { %3184 = dma.done.wait (%p4096_p0), [#allocation5], 512   ;;  %p4097_p11 = pmov %p4096_p0 }
  0x8a   : > { %p4098_p13 = pmov %p4096_p0 }
  0x8b   : > { %3186 = vsyncadd (%p4097_p11), [#allocation5], 4294966784 }
  0x8c   : > { %3188 = dma.done.wait (%p4098_p13), [#allocation8], 3072   ;;  %p4099_p7 = pmov %p4096_p0 }
  0x8d   : > { %s329_s22 = sand.u32 1, %s3290_s28   ;;  %s3499_s19 = sand.u32 1, %s3205_s25  }
  0x8e   : > { %3190 = vsyncadd (%p4099_p7), [#allocation8], 4294964224  ;;  %s2754_s15 = smul.u32 192, %s3499_s19  ;;  %s330_s21 = scalar_lea.sflag [#allocation5], %s329_s22 }
  0x8f   : > { %p4100_p3 = scmp.ne.s32.totalorder %s4082_s12, 0 }
  0x90   : > { %s3502_s29 = scalar_lea.vmem [#allocation9], %s2754_s15 }
  0x91   : > { %3192 = dma.done.wait (%p4100_p3), %s330_s21, 6144  }
  0x92   : > { %3194 = vsyncadd (%p4100_p3), %s330_s21, 4294961152  ;;  %s2346_s14 = sshll.u32 %s3499_s19, 3  ;;  %p385_p8 = scmp.lt.s32.totalorder %s3290_s28, 1 }
  0x93   : > { %s3523_s12 = scalar_lea.vmem [#allocation10], %s2754_s15  ;;  %s3525_s17 = scalar_lea.vmem [#allocation11], %s2346_s14 }
  0x94   : > { %s3511_s23 = scalar_select %p385_p8, %s3290_s28, 1 }
  0x95   : > { %p4101_p9 = scmp.ne.s32.totalorder %s3290_s28, 0 }
  0x96   : > { %s2755_s20 = smul.u32 3, %s3511_s23  ;;  %s391_s0 = scalar_lea.vmem %s4067_s6, %s3511_s23  ;;  %v2837_v0 = vld [vmem:[#allocation7 + $0x4] ss:$12 sps:$4 sm:$0xff] (!%p4101_p9)   ;;  %v2839_v1 = vld [vmem:[#allocation7] ss:$12 sps:$4 sm:$0xff] (!%p4101_p9)   ;;  %v3223_v2 = vmov (!%p4101_p9), 0   ;;  %v439_v29 = vlaneseq (!%p4101_p9) }
  0x97   : > { %396 = sbr.rel (%p4101_p9) target bundleno = 425 (0x1a9), region = 68  ;;  %638 = vmatprep.mubr.bf16.mxu0 (!%p4101_p9), %v3223_v2  ;;  %606 = vmatprep.subr.bf16.mxu0 (!%p4101_p9), %v2837_v0  ;;  %v2840_v3 = vld [vmem:[#allocation7 + $0x1c] ss:$12 sps:$4 sm:$0xff] (!%p4101_p9)   ;;  %v2842_v4 = vld [vmem:[#allocation7 + $0x18] ss:$12 sps:$4 sm:$0xff] (!%p4101_p9)   ;;  %v2871_v27 = vld [vmem:[#allocation4 + $0x10] sm:$0xff] (!%p4101_p9)  }
  0x98   : > { %s3521_s8 = scalar_lea.vmem %s4065_s4, %s2755_s20  ;;  %607 = vmatpush1.bf16.msra.mxu0 (!%p4101_p9), %v2839_v1  ;;  %v2843_v5 = vld [vmem:[#allocation7 + $0x34] ss:$12 sps:$4 sm:$0xff] (!%p4101_p9)   ;;  %v2845_v7 = vld [vmem:[#allocation7 + $0x30] ss:$12 sps:$4 sm:$0xff] (!%p4101_p9)   ;;  %v2846_v8 = vld [vmem:[#allocation7 + $0x4c] ss:$12 sps:$4 sm:$0xff] (!%p4101_p9)  }
  0x99   : > { %608 = vmatprep.subr.bf16.mxu0 (!%p4101_p9), %v2840_v3  ;;  %v2849_v6 = vld [vmem:[#allocation7 + $0x8] ss:$12 sps:$4 sm:$0xff] (!%p4101_p9)   ;;  %v2853_v9 = vld [vmem:[#allocation7 + $0x20] ss:$12 sps:$4 sm:$0xff] (!%p4101_p9)   ;;  %v2857_v10 = vld [vmem:[#allocation7 + $0x38] ss:$12 sps:$4 sm:$0xff] (!%p4101_p9)  }
  0x9a   : > { %2542 = vmatprep.subr.bf16.mxu1 (!%p4101_p9), %v2849_v6  ;;  %v2848_v11 = vld [vmem:[#allocation7 + $0x48] ss:$12 sps:$4 sm:$0xff] (!%p4101_p9)   ;;  %v2850_v12 = vld [vmem:[#allocation7 + $0x64] ss:$12 sps:$4 sm:$0xff] (!%p4101_p9)   ;;  %v2852_v13 = vld [vmem:[#allocation7 + $0x60] ss:$12 sps:$4 sm:$0xff] (!%p4101_p9)  }
  0x9b   : > { %2543 = vmatpush3.bf16.msra.mxu1 (!%p4101_p9), %v2849_v6  ;;  %v2861_v14 = vld [vmem:[#allocation7 + $0x50] ss:$12 sps:$4 sm:$0xff] (!%p4101_p9)   ;;  %v2866_v16 = vld [vmem:[#allocation4] sm:$0xff] (!%p4101_p9)   ;;  %v2865_v17 = vld [vmem:[#allocation7 + $0x68] ss:$12 sps:$4 sm:$0xff] (!%p4101_p9)   ;;  %v440_v30 = vshrl.u32 (!%p4101_p9), %v439_v29, 7 }
  0x9c   : > { %609 = vmatpush1.bf16.msra.mxu0 (!%p4101_p9), %v2842_v4  ;;  %2544 = vmatprep.subr.bf16.mxu1 (!%p4101_p9), %v2853_v9  ;;  %v2854_v15 = vld [vmem:[#allocation7 + $0x7c] ss:$12 sps:$4 sm:$0xff] (!%p4101_p9)   ;;  %v2856_v18 = vld [vmem:[#allocation7 + $0x78] ss:$12 sps:$4 sm:$0xff] (!%p4101_p9)   ;;  %v2858_v19 = vld [vmem:[#allocation7 + $0x94] ss:$12 sps:$4 sm:$0xff] (!%p4101_p9)  }
  0x9d   : > { %610 = vmatprep.subr.bf16.mxu0 (!%p4101_p9), %v2843_v5  ;;  %2558 = vmatprep.mubr.bf16.mxu1 (!%p4101_p9), %v2866_v16  ;;  %v2867_v20 = vld [vmem:[#allocation7 + $0x80] ss:$12 sps:$4 sm:$0xff] (!%p4101_p9)   ;;  %v2860_v21 = vld [vmem:[#allocation7 + $0x90] ss:$12 sps:$4 sm:$0xff] (!%p4101_p9)   ;;  %v2868_v23 = vld [vmem:[#allocation7 + $0x98] ss:$12 sps:$4 sm:$0xff] (!%p4101_p9)  }
  0x9e   : > { %v2862_v22 = vld [vmem:[#allocation7 + $0xac] ss:$12 sps:$4 sm:$0xff]   ;;  %v2864_v24 = vld [vmem:[#allocation7 + $0xa8] ss:$12 sps:$4 sm:$0xff]   ;;  %v2870_v25 = vld [vmem:[#allocation7 + $0xb0] ss:$12 sps:$4 sm:$0xff]  }
  0x9f   : > { %2545 = vmatpush3.bf16.msra.mxu1 %v2853_v9  ;;  %v2869_v26 = vld [vmem:[#allocation4 + $0x8] sm:$0xff]   ;;  %v2872_v28 = vld [vmem:[#allocation4 + $0x18] sm:$0xff]   ;;  %v441_v31 = vsub.s32 0, %v440_v30  ;;  %v437_v32 = vld [vmem:[%s4063_s2] sm:$0x7]  ;;  %v445_v33 = vsub.s32 1, %v440_v30 }
  0xa0   : > { %611 = vmatpush1.bf16.msra.mxu0 %v2845_v7  ;;  %2546 = vmatprep.subr.bf16.mxu1 %v2857_v10  ;;  %v449_v36 = vsub.s32 2, %v440_v30 }
  0xa1   : > { %612 = vmatprep.subr.bf16.mxu0 %v2846_v8  ;;  %v3536_v34 = vrot.slane %v437_v32, %v441_v31  ;;  %v3538_v35 = vrot.slane %v437_v32, %v445_v33 }
  0xa2   : > { %v450_v44 = vrot.slane %v437_v32, %v449_v36 }
  0xa3   : > { %2547 = vmatpush3.bf16.msra.mxu1 %v2857_v10 }
  0xa4   : > { %613 = vmatpush1.bf16.msra.mxu0 %v2848_v11  ;;  %2548 = vmatprep.subr.bf16.mxu1 %v2861_v14 }
  0xa5   : > { %614 = vmatprep.subr.bf16.mxu0 %v2850_v12 }
  0xa7   : > { %2549 = vmatpush3.bf16.msra.mxu1 %v2861_v14 }
  0xa8   : > { %615 = vmatpush1.bf16.msra.mxu0 %v2852_v13  ;;  %2550 = vmatprep.subr.bf16.mxu1 %v2865_v17 }
  0xa9   : > { %616 = vmatprep.subr.bf16.mxu0 %v2854_v15 }
  0xab   : > { %2551 = vmatpush3.bf16.msra.mxu1 %v2865_v17 }
  0xac   : > { %617 = vmatpush1.bf16.msra.mxu0 %v2856_v18  ;;  %2552 = vmatprep.subr.bf16.mxu1 %v2867_v20 }
  0xad   : > { %618 = vmatprep.subr.bf16.mxu0 %v2858_v19 }
  0xaf   : > { %2553 = vmatpush3.bf16.msra.mxu1 %v2867_v20 }
  0xb0   : > { %619 = vmatpush1.bf16.msra.mxu0 %v2860_v21  ;;  %2554 = vmatprep.subr.bf16.mxu1 %v2868_v23 }
  0xb1   : > { %620 = vmatprep.subr.bf16.mxu0 %v2862_v22 }
  0xb3   : > { %2555 = vmatpush3.bf16.msra.mxu1 %v2868_v23 }
  0xb4   : > { %621 = vmatpush1.bf16.msra.mxu0 %v2864_v24  ;;  %2556 = vmatprep.subr.bf16.mxu1 %v2870_v25 }
  0xb7   : > { %639 = vmatmul.mubr.bf16.vlgmr.msra.gmra.mrb[0].mxu0 %v2866_v16  ;;  %2557 = vmatpush3.bf16.msra.mxu1 %v2870_v25 }
  0xb8   : > { %648 = vmatprep.mubr.bf16.mxu0 %v3223_v2 }
  0xba   : > { %2559 = vmatmul.mubr.bf16.vlgmr.msra.gmra.mrb[0].mxu1 %v2869_v26 }
  0xbb   : > { %2562 = vmatprep.mubr.bf16.mxu1 %v2871_v27 }
  0xbf   : > { %649 = vmatmul.mubr.bf16.gmra.mrb[4].mxu0 %v2869_v26 }
  0xc0   : > { %658 = vmatprep.mubr.bf16.mxu0 %v3223_v2 }
  0xc2   : > { %2563 = vmatmul.mubr.bf16.gmra.mrb[4].mxu1 %v2872_v28 }
  0xc7   : > { %659 = vmatmul.mubr.bf16.gmra.mrb[8].mxu0 %v2871_v27 }
  0xc8   : > { %668 = vmatprep.mubr.bf16.mxu0 %v3223_v2 }
  0xcf   : > { %669 = vmatmul.mubr.bf16.gmra.mrb[12].mxu0 %v2872_v28 }
 0x18a   : > { %v640_v37 = vpop.f32.mrb[0].mxu0 }
 0x18b   : > { %v641_v38 = vadd.f32 %v640_v37, %v3536_v34  ;;  %v642_v39 = vpop.f32.mrb[1].mxu0 }
 0x18c   : > { %v643_v40 = vadd.f32 %v642_v39, %v3538_v35  ;;  %v644_v41 = vpop.f32.mrb[2].mxu0 }
 0x18d   : > { %744 = vst [vmem:[#allocation2] sm:$0xff] %v641_v38  ;;  %v645_v42 = vadd.f32 %v644_v41, %v3536_v34  ;;  %v646_v43 = vpop.f32.mrb[3].mxu0  ;;  %v2560_v46 = vpop.f32.mrb[0].mxu1 }
 0x18e   : > { %745 = vst [vmem:[#allocation2 + $0x8] sm:$0xff] %v643_v40  ;;  %v647_v45 = vadd.f32 %v646_v43, %v3538_v35  ;;  %v722_v47 = vadd.f32 %v2560_v46, %v450_v44  ;;  %v713_v48 = vpop.f32.mrb[1].mxu1 }
 0x18f   : > { %747 = vst [vmem:[#allocation2 + $0x18] sm:$0xff] %v645_v42  ;;  %v714_v50 = vadd.f32 %v713_v48, %v450_v44  ;;  %v2561_v51 = vpop.f32.mrb[2].mxu1 }
 0x190   : > { %748 = vst [vmem:[#allocation2 + $0x20] sm:$0xff] %v647_v45  ;;  %752 = vst [vmem:[#allocation2 + $0x40] sm:$0xff] %v722_v47  ;;  %v725_v54 = vadd.f32 %v2561_v51, %v450_v44  ;;  %v716_v55 = vpop.f32.mrb[3].mxu1 }
 0x191   : > { %746 = vst [vmem:[#allocation2 + $0x10] sm:$0xff] %v714_v50  ;;  %v717_v58 = vadd.f32 %v716_v55, %v450_v44 }
 0x192   : > { %v650_v49 = vpop.f32.mrb[4].mxu0  ;;  %755 = vst [vmem:[#allocation2 + $0x58] sm:$0xff] %v725_v54 }
 0x193   : > { %v651_v52 = vadd.f32 %v650_v49, %v3536_v34  ;;  %v652_v53 = vpop.f32.mrb[5].mxu0  ;;  %749 = vst [vmem:[#allocation2 + $0x28] sm:$0xff] %v717_v58 }
 0x194   : > { %v653_v56 = vadd.f32 %v652_v53, %v3538_v35  ;;  %v654_v57 = vpop.f32.mrb[6].mxu0 }
 0x195   : > { %750 = vst [vmem:[#allocation2 + $0x30] sm:$0xff] %v651_v52  ;;  %v655_v59 = vadd.f32 %v654_v57, %v3536_v34  ;;  %v656_v60 = vpop.f32.mrb[7].mxu0  ;;  %v2564_v62 = vpop.f32.mrb[4].mxu1 }
 0x196   : > { %751 = vst [vmem:[#allocation2 + $0x38] sm:$0xff] %v653_v56  ;;  %v657_v61 = vadd.f32 %v656_v60, %v3538_v35  ;;  %v738_v63 = vadd.f32 %v2564_v62, %v450_v44  ;;  %v729_v0 = vpop.f32.mrb[5].mxu1 }
 0x197   : > { %753 = vst [vmem:[#allocation2 + $0x48] sm:$0xff] %v655_v59  ;;  %v730_v2 = vadd.f32 %v729_v0, %v450_v44  ;;  %v2565_v3 = vpop.f32.mrb[6].mxu1 }
 0x198   : > { %754 = vst [vmem:[#allocation2 + $0x50] sm:$0xff] %v657_v61  ;;  %764 = vst [vmem:[#allocation2 + $0xa0] sm:$0xff] %v738_v63  ;;  %v741_v6 = vadd.f32 %v2565_v3, %v450_v44  ;;  %v732_v7 = vpop.f32.mrb[7].mxu1 }
 0x199   : > { %758 = vst [vmem:[#allocation2 + $0x70] sm:$0xff] %v730_v2  ;;  %v733_v10 = vadd.f32 %v732_v7, %v450_v44 }
 0x19a   : > { %v660_v1 = vpop.f32.mrb[8].mxu0  ;;  %767 = vst [vmem:[#allocation2 + $0xb8] sm:$0xff] %v741_v6 }
 0x19b   : > { %v661_v4 = vadd.f32 %v660_v1, %v3536_v34  ;;  %v662_v5 = vpop.f32.mrb[9].mxu0  ;;  %761 = vst [vmem:[#allocation2 + $0x88] sm:$0xff] %v733_v10 }
 0x19c   : > { %v663_v8 = vadd.f32 %v662_v5, %v3538_v35  ;;  %v664_v9 = vpop.f32.mrb[10].mxu0 }
 0x19d   : > { %756 = vst [vmem:[#allocation2 + $0x60] sm:$0xff] %v661_v4  ;;  %v665_v11 = vadd.f32 %v664_v9, %v3536_v34  ;;  %v666_v12 = vpop.f32.mrb[11].mxu0 }
 0x19e   : > { %757 = vst [vmem:[#allocation2 + $0x68] sm:$0xff] %v663_v8  ;;  %v667_v13 = vadd.f32 %v666_v12, %v3538_v35 }
 0x19f   : > { %759 = vst [vmem:[#allocation2 + $0x78] sm:$0xff] %v665_v11 }
 0x1a0   : > { %760 = vst [vmem:[#allocation2 + $0x80] sm:$0xff] %v667_v13 }
 0x1a2   : > { %v670_v14 = vpop.f32.mrb[12].mxu0 }
 0x1a3   : > { %v671_v15 = vadd.f32 %v670_v14, %v3536_v34  ;;  %v672_v16 = vpop.f32.mrb[13].mxu0 }
 0x1a4   : > { %v673_v17 = vadd.f32 %v672_v16, %v3538_v35  ;;  %v674_v18 = vpop.f32.mrb[14].mxu0 }
 0x1a5   : > { %762 = vst [vmem:[#allocation2 + $0x90] sm:$0xff] %v671_v15  ;;  %v675_v19 = vadd.f32 %v674_v18, %v3536_v34  ;;  %v676_v20 = vpop.f32.mrb[15].mxu0 }
 0x1a6   : > { %763 = vst [vmem:[#allocation2 + $0x98] sm:$0xff] %v673_v17  ;;  %v677_v21 = vadd.f32 %v676_v20, %v3538_v35 }
 0x1a7   : > { %765 = vst [vmem:[#allocation2 + $0xa8] sm:$0xff] %v675_v19 }
 0x1a8   : > { %766 = vst [vmem:[#allocation2 + $0xb0] sm:$0xff] %v677_v21 }
 0x1a9 PF: > { %p2376_p12 = scmp.le.s32.totalorder %s3290_s28, 0 }
 0x1aa   : > { %v2873_v22 = vld [vmem:[%s3502_s29 + $0x4] ss:$12 sps:$4 sm:$0xff] (!%p2376_p12)   ;;  %v2875_v23 = vld [vmem:[%s3502_s29] ss:$12 sps:$4 sm:$0xff] (!%p2376_p12)   ;;  %v3224_v24 = vmov (!%p2376_p12), 0   ;;  %v775_v51 = vld [vmem:[#allocation3 + $0x18] sm:$0xff] (!%p2376_p12)  ;;  %v818_v59 = vlaneseq (!%p2376_p12) }
 0x1ab   : > { %771 = sbr.rel (%p2376_p12) target bundleno = 701 (0x2bd), region = 72  ;;  %993 = vmatprep.mubr.bf16.mxu0 (!%p2376_p12), %v3224_v24  ;;  %961 = vmatprep.subr.bf16.mxu0 (!%p2376_p12), %v2873_v22  ;;  %v2876_v25 = vld [vmem:[%s3502_s29 + $0x1c] ss:$12 sps:$4 sm:$0xff] (!%p2376_p12)   ;;  %v2878_v26 = vld [vmem:[%s3502_s29 + $0x18] ss:$12 sps:$4 sm:$0xff] (!%p2376_p12)   ;;  %v774_v50 = vld [vmem:[#allocation3 + $0x10] sm:$0xff] (!%p2376_p12) }
 0x1ac   : > { %962 = vmatpush1.bf16.msra.mxu0 (!%p2376_p12), %v2875_v23  ;;  %v2879_v27 = vld [vmem:[%s3502_s29 + $0x34] ss:$12 sps:$4 sm:$0xff] (!%p2376_p12)   ;;  %v2881_v29 = vld [vmem:[%s3502_s29 + $0x30] ss:$12 sps:$4 sm:$0xff] (!%p2376_p12)   ;;  %v2882_v30 = vld [vmem:[%s3502_s29 + $0x4c] ss:$12 sps:$4 sm:$0xff] (!%p2376_p12)   ;;  %v781_v54 = vpack.c.bf16 (!%p2376_p12), %v775_v51, %v774_v50 }
 0x1ad   : > { %963 = vmatprep.subr.bf16.mxu0 (!%p2376_p12), %v2876_v25  ;;  %v2885_v28 = vld [vmem:[%s3502_s29 + $0x8] ss:$12 sps:$4 sm:$0xff] (!%p2376_p12)   ;;  %v2889_v31 = vld [vmem:[%s3502_s29 + $0x20] ss:$12 sps:$4 sm:$0xff] (!%p2376_p12)   ;;  %v2893_v32 = vld [vmem:[%s3502_s29 + $0x38] ss:$12 sps:$4 sm:$0xff] (!%p2376_p12)  }
 0x1ae   : > { %2566 = vmatprep.subr.bf16.mxu1 (!%p2376_p12), %v2885_v28  ;;  %v2884_v33 = vld [vmem:[%s3502_s29 + $0x48] ss:$12 sps:$4 sm:$0xff] (!%p2376_p12)   ;;  %v2886_v34 = vld [vmem:[%s3502_s29 + $0x64] ss:$12 sps:$4 sm:$0xff] (!%p2376_p12)   ;;  %v2888_v35 = vld [vmem:[%s3502_s29 + $0x60] ss:$12 sps:$4 sm:$0xff] (!%p2376_p12)  }
 0x1af   : > { %2567 = vmatpush3.bf16.msra.mxu1 (!%p2376_p12), %v2885_v28  ;;  %v2897_v36 = vld [vmem:[%s3502_s29 + $0x50] ss:$12 sps:$4 sm:$0xff] (!%p2376_p12)   ;;  %v772_v38 = vld [vmem:[#allocation3] sm:$0xff] (!%p2376_p12)  ;;  %v773_v39 = vld [vmem:[#allocation3 + $0x8] sm:$0xff] (!%p2376_p12)  ;;  %v819_v60 = vshrl.u32 (!%p2376_p12), %v818_v59, 7 }
 0x1b0   : > { %964 = vmatpush1.bf16.msra.mxu0 (!%p2376_p12), %v2878_v26  ;;  %2568 = vmatprep.subr.bf16.mxu1 (!%p2376_p12), %v2889_v31  ;;  %v2890_v37 = vld [vmem:[%s3502_s29 + $0x7c] ss:$12 sps:$4 sm:$0xff] (!%p2376_p12)   ;;  %v780_v40 = vpack.c.bf16 (!%p2376_p12), %v773_v39, %v772_v38  ;;  %v2892_v42 = vld [vmem:[%s3502_s29 + $0x78] ss:$12 sps:$4 sm:$0xff] (!%p2376_p12)   ;;  %v2894_v43 = vld [vmem:[%s3502_s29 + $0x94] ss:$12 sps:$4 sm:$0xff] (!%p2376_p12)  }
 0x1b1   : > { %965 = vmatprep.subr.bf16.mxu0 (!%p2376_p12), %v2879_v27  ;;  %v2901_v41 = vld [vmem:[%s3502_s29 + $0x68] ss:$12 sps:$4 sm:$0xff] (!%p2376_p12)   ;;  %v2902_v44 = vld [vmem:[%s3502_s29 + $0x80] ss:$12 sps:$4 sm:$0xff] (!%p2376_p12)   ;;  %v2896_v45 = vld [vmem:[%s3502_s29 + $0x90] ss:$12 sps:$4 sm:$0xff] (!%p2376_p12)  }
 0x1b2   : > { %2582 = vmatprep.mubr.bf16.mxu1 %v780_v40  ;;  %v2898_v46 = vld [vmem:[%s3502_s29 + $0xac] ss:$12 sps:$4 sm:$0xff]   ;;  %v2900_v48 = vld [vmem:[%s3502_s29 + $0xa8] ss:$12 sps:$4 sm:$0xff]   ;;  %v2904_v49 = vld [vmem:[%s3502_s29 + $0xb0] ss:$12 sps:$4 sm:$0xff]  }
 0x1b3   : > { %2569 = vmatpush3.bf16.msra.mxu1 %v2889_v31  ;;  %v2903_v47 = vld [vmem:[%s3502_s29 + $0x98] ss:$12 sps:$4 sm:$0xff]   ;;  %v777_v53 = vld [vmem:[#allocation3 + $0x28] sm:$0xff]  ;;  %v778_v56 = vld [vmem:[#allocation3 + $0x30] sm:$0xff]  ;;  %v820_v61 = vsub.s32 0, %v819_v60  ;;  %v824_v63 = vsub.s32 1, %v819_v60 }
 0x1b4   : > { %966 = vmatpush1.bf16.msra.mxu0 %v2881_v29  ;;  %2570 = vmatprep.subr.bf16.mxu1 %v2893_v32  ;;  %v776_v52 = vld [vmem:[#allocation3 + $0x20] sm:$0xff]  ;;  %v779_v57 = vld [vmem:[#allocation3 + $0x38] sm:$0xff]  ;;  %v828_v2 = vsub.s32 2, %v819_v60 }
 0x1b5   : > { %967 = vmatprep.subr.bf16.mxu0 %v2882_v30  ;;  %v782_v55 = vpack.c.bf16 %v777_v53, %v776_v52  ;;  %v783_v58 = vpack.c.bf16 %v779_v57, %v778_v56  ;;  %v816_v62 = vld [vmem:[%s3521_s8] sm:$0x7] }
 0x1b6   : > { %v3586_v0 = vrot.slane %v816_v62, %v820_v61  ;;  %v3588_v1 = vrot.slane %v816_v62, %v824_v63  ;;  %v829_v10 = vrot.slane %v816_v62, %v828_v2 }
 0x1b7   : > { %2571 = vmatpush3.bf16.msra.mxu1 %v2893_v32 }
 0x1b8   : > { %968 = vmatpush1.bf16.msra.mxu0 %v2884_v33  ;;  %2572 = vmatprep.subr.bf16.mxu1 %v2897_v36 }
 0x1b9   : > { %969 = vmatprep.subr.bf16.mxu0 %v2886_v34 }
 0x1bb   : > { %2573 = vmatpush3.bf16.msra.mxu1 %v2897_v36 }
 0x1bc   : > { %970 = vmatpush1.bf16.msra.mxu0 %v2888_v35  ;;  %2574 = vmatprep.subr.bf16.mxu1 %v2901_v41 }
 0x1bd   : > { %971 = vmatprep.subr.bf16.mxu0 %v2890_v37 }
 0x1bf   : > { %2575 = vmatpush3.bf16.msra.mxu1 %v2901_v41 }
 0x1c0   : > { %972 = vmatpush1.bf16.msra.mxu0 %v2892_v42  ;;  %2576 = vmatprep.subr.bf16.mxu1 %v2902_v44 }
 0x1c1   : > { %973 = vmatprep.subr.bf16.mxu0 %v2894_v43 }
 0x1c3   : > { %2577 = vmatpush3.bf16.msra.mxu1 %v2902_v44 }
 0x1c4   : > { %974 = vmatpush1.bf16.msra.mxu0 %v2896_v45  ;;  %2578 = vmatprep.subr.bf16.mxu1 %v2903_v47 }
 0x1c5   : > { %975 = vmatprep.subr.bf16.mxu0 %v2898_v46 }
 0x1c7   : > { %2579 = vmatpush3.bf16.msra.mxu1 %v2903_v47 }
 0x1c8   : > { %976 = vmatpush1.bf16.msra.mxu0 %v2900_v48  ;;  %2580 = vmatprep.subr.bf16.mxu1 %v2904_v49 }
 0x1cb   : > { %994 = vmatmul.mubr.bf16.vlgmr.msra.gmra.mrb[0].mxu0 %v780_v40  ;;  %2581 = vmatpush3.bf16.msra.mxu1 %v2904_v49 }
 0x1cc   : > { %1003 = vmatprep.mubr.bf16.mxu0 %v3224_v24 }
 0x1ce   : > { %2583 = vmatmul.mubr.bf16.vlgmr.msra.gmra.mrb[0].mxu1 %v781_v54 }
 0x1cf   : > { %2586 = vmatprep.mubr.bf16.mxu1 %v782_v55 }
 0x1d3   : > { %1004 = vmatmul.mubr.bf16.gmra.mrb[4].mxu0 %v781_v54 }
 0x1d4   : > { %1013 = vmatprep.mubr.bf16.mxu0 %v3224_v24 }
 0x1d6   : > { %2587 = vmatmul.mubr.bf16.gmra.mrb[4].mxu1 %v783_v58 }
 0x1db   : > { %1014 = vmatmul.mubr.bf16.gmra.mrb[8].mxu0 %v782_v55 }
 0x1dc   : > { %1023 = vmatprep.mubr.bf16.mxu0 %v3224_v24 }
 0x1e3   : > { %1024 = vmatmul.mubr.bf16.gmra.mrb[12].mxu0 %v783_v58 }
 0x29e   : > { %v995_v3 = vpop.f32.mrb[0].mxu0 }
 0x29f   : > { %v996_v4 = vadd.f32 %v995_v3, %v3586_v0  ;;  %v997_v5 = vpop.f32.mrb[1].mxu0 }
 0x2a0   : > { %v998_v6 = vadd.f32 %v997_v5, %v3588_v1  ;;  %v999_v7 = vpop.f32.mrb[2].mxu0 }
 0x2a1   : > { %1099 = vst [vmem:[#allocation2] sm:$0xff] %v996_v4  ;;  %v1000_v8 = vadd.f32 %v999_v7, %v3586_v0  ;;  %v1001_v9 = vpop.f32.mrb[3].mxu0  ;;  %v2584_v12 = vpop.f32.mrb[0].mxu1 }
 0x2a2   : > { %1100 = vst [vmem:[#allocation2 + $0x8] sm:$0xff] %v998_v6  ;;  %v1002_v11 = vadd.f32 %v1001_v9, %v3588_v1  ;;  %v1077_v13 = vadd.f32 %v2584_v12, %v829_v10  ;;  %v1068_v14 = vpop.f32.mrb[1].mxu1 }
 0x2a3   : > { %1102 = vst [vmem:[#allocation2 + $0x18] sm:$0xff] %v1000_v8  ;;  %v1069_v16 = vadd.f32 %v1068_v14, %v829_v10  ;;  %v2585_v17 = vpop.f32.mrb[2].mxu1 }
 0x2a4   : > { %1103 = vst [vmem:[#allocation2 + $0x20] sm:$0xff] %v1002_v11  ;;  %1107 = vst [vmem:[#allocation2 + $0x40] sm:$0xff] %v1077_v13  ;;  %v1080_v20 = vadd.f32 %v2585_v17, %v829_v10  ;;  %v1071_v21 = vpop.f32.mrb[3].mxu1 }
 0x2a5   : > { %1101 = vst [vmem:[#allocation2 + $0x10] sm:$0xff] %v1069_v16  ;;  %v1072_v24 = vadd.f32 %v1071_v21, %v829_v10 }
 0x2a6   : > { %v1005_v15 = vpop.f32.mrb[4].mxu0  ;;  %1110 = vst [vmem:[#allocation2 + $0x58] sm:$0xff] %v1080_v20 }
 0x2a7   : > { %v1006_v18 = vadd.f32 %v1005_v15, %v3586_v0  ;;  %v1007_v19 = vpop.f32.mrb[5].mxu0  ;;  %1104 = vst [vmem:[#allocation2 + $0x28] sm:$0xff] %v1072_v24 }
 0x2a8   : > { %v1008_v22 = vadd.f32 %v1007_v19, %v3588_v1  ;;  %v1009_v23 = vpop.f32.mrb[6].mxu0 }
 0x2a9   : > { %1105 = vst [vmem:[#allocation2 + $0x30] sm:$0xff] %v1006_v18  ;;  %v1010_v25 = vadd.f32 %v1009_v23, %v3586_v0  ;;  %v1011_v26 = vpop.f32.mrb[7].mxu0  ;;  %v2588_v28 = vpop.f32.mrb[4].mxu1 }
 0x2aa   : > { %1106 = vst [vmem:[#allocation2 + $0x38] sm:$0xff] %v1008_v22  ;;  %v1012_v27 = vadd.f32 %v1011_v26, %v3588_v1  ;;  %v1093_v29 = vadd.f32 %v2588_v28, %v829_v10  ;;  %v1084_v30 = vpop.f32.mrb[5].mxu1 }
 0x2ab   : > { %1108 = vst [vmem:[#allocation2 + $0x48] sm:$0xff] %v1010_v25  ;;  %v1085_v32 = vadd.f32 %v1084_v30, %v829_v10  ;;  %v2589_v33 = vpop.f32.mrb[6].mxu1 }
 0x2ac   : > { %1109 = vst [vmem:[#allocation2 + $0x50] sm:$0xff] %v1012_v27  ;;  %1119 = vst [vmem:[#allocation2 + $0xa0] sm:$0xff] %v1093_v29  ;;  %v1096_v36 = vadd.f32 %v2589_v33, %v829_v10  ;;  %v1087_v37 = vpop.f32.mrb[7].mxu1 }
 0x2ad   : > { %1113 = vst [vmem:[#allocation2 + $0x70] sm:$0xff] %v1085_v32  ;;  %v1088_v40 = vadd.f32 %v1087_v37, %v829_v10 }
 0x2ae   : > { %v1015_v31 = vpop.f32.mrb[8].mxu0  ;;  %1122 = vst [vmem:[#allocation2 + $0xb8] sm:$0xff] %v1096_v36 }
 0x2af   : > { %v1016_v34 = vadd.f32 %v1015_v31, %v3586_v0  ;;  %v1017_v35 = vpop.f32.mrb[9].mxu0  ;;  %1116 = vst [vmem:[#allocation2 + $0x88] sm:$0xff] %v1088_v40 }
 0x2b0   : > { %v1018_v38 = vadd.f32 %v1017_v35, %v3588_v1  ;;  %v1019_v39 = vpop.f32.mrb[10].mxu0 }
 0x2b1   : > { %1111 = vst [vmem:[#allocation2 + $0x60] sm:$0xff] %v1016_v34  ;;  %v1020_v41 = vadd.f32 %v1019_v39, %v3586_v0  ;;  %v1021_v42 = vpop.f32.mrb[11].mxu0 }
 0x2b2   : > { %1112 = vst [vmem:[#allocation2 + $0x68] sm:$0xff] %v1018_v38  ;;  %v1022_v43 = vadd.f32 %v1021_v42, %v3588_v1 }
 0x2b3   : > { %1114 = vst [vmem:[#allocation2 + $0x78] sm:$0xff] %v1020_v41 }
 0x2b4   : > { %1115 = vst [vmem:[#allocation2 + $0x80] sm:$0xff] %v1022_v43 }
 0x2b6   : > { %v1025_v44 = vpop.f32.mrb[12].mxu0 }
 0x2b7   : > { %v1026_v45 = vadd.f32 %v1025_v44, %v3586_v0  ;;  %v1027_v46 = vpop.f32.mrb[13].mxu0 }
 0x2b8   : > { %v1028_v47 = vadd.f32 %v1027_v46, %v3588_v1  ;;  %v1029_v48 = vpop.f32.mrb[14].mxu0 }
 0x2b9   : > { %1117 = vst [vmem:[#allocation2 + $0x90] sm:$0xff] %v1026_v45  ;;  %v1030_v49 = vadd.f32 %v1029_v48, %v3586_v0  ;;  %v1031_v50 = vpop.f32.mrb[15].mxu0 }
 0x2ba   : > { %1118 = vst [vmem:[#allocation2 + $0x98] sm:$0xff] %v1028_v47  ;;  %v1032_v51 = vadd.f32 %v1031_v50, %v3588_v1 }
 0x2bb   : > { %1120 = vst [vmem:[#allocation2 + $0xa8] sm:$0xff] %v1030_v49 }
 0x2bc   : > { %1121 = vst [vmem:[#allocation2 + $0xb0] sm:$0xff] %v1032_v51 }
 0x2bd PF: > { %v3607_v52 = vld [vmem:[%s3523_s12 + $0x4] ss:$12 sps:$4 sm:$0xff]   ;;  %v3610_v53 = vld [vmem:[%s3523_s12] ss:$12 sps:$4 sm:$0xff]   ;;  %v3225_v54 = vmov 0.0   ;;  %v3226_v55 = vmov 0  }
 0x2be   : > { %2590 = vmatprep.subr.bf16.mxu1 %v3225_v54  ;;  %1328 = vmatprep.mubr.bf16.mxu0 %v3226_v55  ;;  %v3616_v56 = vld [vmem:[%s3523_s12 + $0x1c] ss:$12 sps:$4 sm:$0xff]   ;;  %vm3227_vm0 = vmmov 0   ;;  %v3622_v57 = vld [vmem:[%s3523_s12 + $0x18] ss:$12 sps:$4 sm:$0xff]   ;;  %v1167_v35 = vld [vmem:[#allocation2 + $0x10] sm:$0xff] }
 0x2bf   : > { %1296 = vmatprep.subr.bf16.mxu0 %v3607_v52  ;;  %2606 = vmatprep.mubr.msk.bf16.mxu1 %vm3227_vm0, %v3225_v54  ;;  %v3626_v58 = vld [vmem:[%s3523_s12 + $0x34] ss:$12 sps:$4 sm:$0xff]   ;;  %v3630_v59 = vld [vmem:[%s3523_s12 + $0x30] ss:$12 sps:$4 sm:$0xff]   ;;  %v3634_v60 = vld [vmem:[%s3523_s12 + $0x4c] ss:$12 sps:$4 sm:$0xff]  }
 0x2c0   : > { %1297 = vmatpush1.bf16.msra.mxu0 %v3610_v53  ;;  %v3637_v61 = vld [vmem:[%s3523_s12 + $0x8] ss:$12 sps:$4 sm:$0xff]   ;;  %v3646_v63 = vld [vmem:[%s3523_s12 + $0x64] ss:$12 sps:$4 sm:$0xff]   ;;  %v3650_v0 = vld [vmem:[%s3523_s12 + $0x20] ss:$12 sps:$4 sm:$0xff]  }
 0x2c1   : > { %1298 = vmatprep.subr.bf16.mxu0 %v3616_v56  ;;  %v3641_v62 = vld [vmem:[%s3523_s12 + $0x48] ss:$12 sps:$4 sm:$0xff]   ;;  %2591 = vmatpush3.bf16.msra.mxu1 %v3637_v61  ;;  %v3653_v1 = vld [vmem:[%s3523_s12 + $0x60] ss:$12 sps:$4 sm:$0xff]   ;;  %v3658_v2 = vld [vmem:[%s3523_s12 + $0x38] ss:$12 sps:$4 sm:$0xff]  }
 0x2c2   : > { %2592 = vmatprep.subr.bf16.mxu1 %v3225_v54  ;;  %v3662_v3 = vld [vmem:[%s3523_s12 + $0x7c] ss:$12 sps:$4 sm:$0xff]   ;;  %v3667_v4 = vld [vmem:[%s3523_s12 + $0x78] ss:$12 sps:$4 sm:$0xff]   ;;  %v3675_v6 = vld [vmem:[%s3523_s12 + $0x94] ss:$12 sps:$4 sm:$0xff]  }
 0x2c3   : > { %v3671_v5 = vld [vmem:[%s3523_s12 + $0x50] ss:$12 sps:$4 sm:$0xff]   ;;  %v3684_v8 = vld [vmem:[%s3523_s12 + $0x68] ss:$12 sps:$4 sm:$0xff]   ;;  %v3688_v9 = vld [vmem:[%s3523_s12 + $0xac] ss:$12 sps:$4 sm:$0xff]  }
 0x2c4   : > { %1299 = vmatpush1.bf16.msra.mxu0 %v3622_v57  ;;  %v3680_v7 = vld [vmem:[%s3523_s12 + $0x90] ss:$12 sps:$4 sm:$0xff]   ;;  %v3693_v10 = vld [vmem:[%s3523_s12 + $0xa8] ss:$12 sps:$4 sm:$0xff]   ;;  %v3697_v11 = vld [vmem:[%s3523_s12 + $0x80] ss:$12 sps:$4 sm:$0xff]  }
 0x2c5   : > { %1300 = vmatprep.subr.bf16.mxu0 %v3626_v58  ;;  %2593 = vmatpush3.bf16.msra.mxu1 %v3650_v0  ;;  %v3704_v12 = vld [vmem:[%s3523_s12 + $0x98] ss:$12 sps:$4 sm:$0xff]   ;;  %v3711_v13 = vld [vmem:[%s3523_s12 + $0xb0] ss:$12 sps:$4 sm:$0xff]   ;;  %v1166_v17 = vld [vmem:[#allocation2 + $0x8] sm:$0xff]  ;;  %s2443_s21 = sshll.u32 %s3290_s28, 7 }
 0x2c6   : > { %2594 = vmatprep.subr.bf16.mxu1 %v3225_v54  ;;  %v1165_v14 = vld [vmem:[#allocation2] sm:$0xff]  ;;  %v1403_v45 = vld [vmem:[#allocation2 + $0x18] sm:$0xff]  ;;  %s2199_s29 = sshll.u32 %s3525_s17, 4  ;;  %s4016_s20 = scalar_lea.hbm %s4068_s7, %s2443_s21  ;;  %s4018_s29 = int_to_ptr.vmem [resolvable:$true] %s2199_s29 }
 0x2c7   : > { %v3757_v31 = vld [vmem:[%s391_s0] ss:$0 sm:$0xff]  ;;  %s2186_s30 = scalar_lea.sflag [#allocation6], %s3499_s19  ;;  %s3139_s11 = scalar_lea.vmem %s4018_s29, 128 }
 0x2c8   : > { %1301 = vmatpush1.bf16.msra.mxu0 %v3630_v59  ;;  %v1404_v49 = vld [vmem:[#allocation2 + $0x20] sm:$0xff]  ;;  %p3140_p10 = scmp.ne.s32.totalorder %s4018_s29, %s3139_s11  ;;  %p4102_p2 = scmp.ne.s32.totalorder %s4083_s13, 0 }
 0x2c9   : > { %1302 = vmatprep.subr.bf16.mxu0 %v3634_v60  ;;  %2595 = vmatpush3.bf16.msra.mxu1 %v3658_v2  ;;  %s3228_s28 = smov [#allocation11]  }
 0x2ca   : > { %2596 = vmatprep.subr.bf16.mxu1 %v3225_v54  ;;  %p3141_p4 = pnand %p3140_p10, %p4102_p2  ;;  %s3143_s0 = sshll.u32 %s3228_s28, 4  ;;  %s3144_s0 = int_to_ptr.vmem [resolvable:$false] %s3143_s0 }
 0x2cb   : > { %s3145_s9 = scalar_lea.vmem %s3144_s0, 256  ;;  %p3146_p5 = scmp.lt.s32.totalorder %s4018_s29, %s3144_s0 }
 0x2cc   : > { %1303 = vmatpush1.bf16.msra.mxu0 %v3641_v62  ;;  %p3142_p1 = pneg %p3141_p4  ;;  %p3147_p6 = scmp.lt.s32.totalorder %s3145_s9, %s3139_s11 }
 0x2cd   : > { %1304 = vmatprep.subr.bf16.mxu0 %v3646_v63  ;;  %2597 = vmatpush3.bf16.msra.mxu1 %v3671_v5 }
 0x2ce   : > { %2598 = vmatprep.subr.bf16.mxu1 %v3225_v54  ;;  %p3148_p0 = por %p3147_p6, %p3146_p5 }
 0x2d0   : > { %1305 = vmatpush1.bf16.msra.mxu0 %v3653_v1  ;;  %p3149_p11 = pnand %p3148_p0, %p3142_p1 }
 0x2d1   : > { %1306 = vmatprep.subr.bf16.mxu0 %v3662_v3  ;;  %2599 = vmatpush3.bf16.msra.mxu1 %v3684_v8 }
 0x2d2   : > { %2600 = vmatprep.subr.bf16.mxu1 %v3225_v54 }
 0x2d4   : > { %1307 = vmatpush1.bf16.msra.mxu0 %v3667_v4 }
 0x2d5   : > { %1308 = vmatprep.subr.bf16.mxu0 %v3675_v6  ;;  %2601 = vmatpush3.bf16.msra.mxu1 %v3697_v11 }
 0x2d6   : > { %2602 = vmatprep.subr.bf16.mxu1 %v3225_v54 }
 0x2d8   : > { %1309 = vmatpush1.bf16.msra.mxu0 %v3680_v7 }
 0x2d9   : > { %1310 = vmatprep.subr.bf16.mxu0 %v3688_v9  ;;  %2603 = vmatpush3.bf16.msra.mxu1 %v3704_v12 }
 0x2da   : > { %2604 = vmatprep.subr.bf16.mxu1 %v3225_v54 }
 0x2dc   : > { %1311 = vmatpush1.bf16.msra.mxu0 %v3693_v10 }
 0x2dd   : > { %1407 = vmatprep.subr.bf16.mxu0 %v3607_v52  ;;  %2605 = vmatpush3.bf16.msra.mxu1 %v3711_v13 }
 0x2de   : > { %2610 = vmatprep.subr.bf16.mxu1 %v3225_v54 }
 0x2df   : > { %1329 = vmatmul.mubr.bf16.vlgmr.msra.gmra.mrb[0].mxu0 %v3226_v55 }
 0x2e0   : > { %1408 = vmatpush1.bf16.msra.mxu0 %v3610_v53  ;;  %1439 = vmatprep.mubr.bf16.mxu0 %v3226_v55 }
 0x2e1   : > { %1409 = vmatprep.subr.bf16.mxu0 %v3616_v56  ;;  %2607 = vmatmul.mubr.bf16.vlgmr.msra.gmra.mrb[0].mxu1 %v3226_v55 }
 0x2e2   : > { %2611 = vmatpush3.bf16.msra.mxu1 %v3637_v61  ;;  %2626 = vmatprep.mubr.msk.bf16.mxu1 %vm3227_vm0, %v3225_v54 }
 0x2e3   : > { %2612 = vmatprep.subr.bf16.mxu1 %v3225_v54 }
 0x2e4   : > { %1410 = vmatpush1.bf16.msra.mxu0 %v3622_v57 }
 0x2e5   : > { %1411 = vmatprep.subr.bf16.mxu0 %v3626_v58 }
 0x2e6   : > { %2613 = vmatpush3.bf16.msra.mxu1 %v3650_v0 }
 0x2e7   : > { %2614 = vmatprep.subr.bf16.mxu1 %v3225_v54 }
 0x2e8   : > { %1412 = vmatpush1.bf16.msra.mxu0 %v3630_v59 }
 0x2e9   : > { %1413 = vmatprep.subr.bf16.mxu0 %v3634_v60 }
 0x2ea   : > { %2615 = vmatpush3.bf16.msra.mxu1 %v3658_v2 }
 0x2eb   : > { %2616 = vmatprep.subr.bf16.mxu1 %v3225_v54 }
 0x2ec   : > { %1414 = vmatpush1.bf16.msra.mxu0 %v3641_v62 }
 0x2ed   : > { %1415 = vmatprep.subr.bf16.mxu0 %v3646_v63 }
 0x2ee   : > { %2617 = vmatpush3.bf16.msra.mxu1 %v3671_v5 }
 0x2ef   : > { %2618 = vmatprep.subr.bf16.mxu1 %v3225_v54 }
 0x2f0   : > { %1416 = vmatpush1.bf16.msra.mxu0 %v3653_v1 }
 0x2f1   : > { %1417 = vmatprep.subr.bf16.mxu0 %v3662_v3 }
 0x2f2   : > { %2619 = vmatpush3.bf16.msra.mxu1 %v3684_v8 }
 0x2f3   : > { %2620 = vmatprep.subr.bf16.mxu1 %v3225_v54 }
 0x2f4   : > { %1418 = vmatpush1.bf16.msra.mxu0 %v3667_v4 }
 0x2f5   : > { %1419 = vmatprep.subr.bf16.mxu0 %v3675_v6 }
 0x2f6   : > { %2621 = vmatpush3.bf16.msra.mxu1 %v3697_v11 }
 0x2f7   : > { %2622 = vmatprep.subr.bf16.mxu1 %v3225_v54 }
 0x2f8   : > { %1420 = vmatpush1.bf16.msra.mxu0 %v3680_v7 }
 0x2f9   : > { %1421 = vmatprep.subr.bf16.mxu0 %v3688_v9 }
 0x2fa   : > { %2623 = vmatpush3.bf16.msra.mxu1 %v3704_v12 }
 0x2fb   : > { %2624 = vmatprep.subr.bf16.mxu1 %v3225_v54 }
 0x2fc   : > { %1422 = vmatpush1.bf16.msra.mxu0 %v3693_v10 }
 0x2fd   : > { %1519 = vmatprep.subr.bf16.mxu0 %v3607_v52 }
 0x2fe   : > { %2625 = vmatpush3.bf16.msra.mxu1 %v3711_v13 }
 0x2ff   : > { %2630 = vmatprep.subr.bf16.mxu1 %v3225_v54 }
 0x3b2   : > { %v1330_v15 = vpop.f32.mrb[0].mxu0 }
 0x3b3   : > { %v1377_v16 = vadd.f32 %v1330_v15, %v1165_v14  ;;  %v1332_v18 = vpop.f32.mrb[1].mxu0 }
 0x3b4   : > { %v1334_v19 = vpop.f32.mrb[2].mxu0  ;;  %v1384_v22 = vadd.f32 %v1332_v18, %v1166_v17  ;;  %v1371_v24 = vpop.f32.mrb[0].mxu1 }
 0x3b5   : > { %v2426_v20 = vmul.f32 -1.442695, %v1377_v16  ;;  %v1335_v21 = vpop.f32.mrb[3].mxu0  ;;  %v2608_v25 = vpop.f32.mrb[1].mxu1  ;;  %v1391_v33 = vadd.f32 %v3757_v31, %v1371_v24 }
 0x3b6   : > { %v2427_v23 = vmul.f32 -1.442695, %v1384_v22  ;;  %v1374_v26 = vpop.f32.mrb[2].mxu1 }
 0x3b7   : > { %2937 = vpow2.f32 %v2426_v20  ;;  %v2609_v27 = vpop.f32.mrb[3].mxu1 }
 0x3b8   : > { %2939 = vpow2.f32 %v2427_v23  ;;  %v1405_v27 = vld [vmem:[#allocation2 + $0x28] sm:$0xff] }
 0x3c1   : > { %v2938_v28 = vpop.eup %2937 }
 0x3c2   : > { %v1381_v29 = vadd.f32 1.0, %v2938_v28  ;;  %v2940_v30 = vpop.eup %2939 }
 0x3c3   : > { %v1388_v32 = vadd.f32 1.0, %v2940_v30 }
 0x3c4   : > { %2941 = vrcp.f32 %v1381_v29 }
 0x3c5   : > { %2943 = vrcp.f32 %v1388_v32 }
 0x3ce   : > { %v2942_v34 = vpop.eup %2941 }
 0x3cf   : > { %v1392_v36 = vmul.f32 %v2942_v34, %v1391_v33  ;;  %v2944_v38 = vpop.eup %2943 }
 0x3d0   : > { %v1395_v39 = vsub.f32 1.0, %v2944_v38  ;;  %v1397_v42 = vmul.f32 0.0, %v2944_v38  ;;  %v1515_v38 = vld [vmem:[#allocation2 + $0x30] sm:$0xff] }
 0x3d1   : > { %v1393_v37 = vadd.f32 %v1392_v36, %v1167_v35 }
 0x3d3   : > { %2945 = vtanh.f32 %v1393_v37 }
 0x3dd   : > { %v2946_v40 = vpop.eup %2945 }
 0x3de   : > { %v1396_v41 = vmul.f32 %v2946_v40, %v1395_v39 }
 0x3e0   : > { %v3760_v43 = vadd.f32 %v1397_v42, %v1396_v41  ;;  %v1516_v42 = vld [vmem:[#allocation2 + $0x38] sm:$0xff] }
 0x3e2   : > { %1399 = vst [vmem:[#allocation3] sm:$0xff] %v3760_v43  ;;  %v1406_v44 = vpack.c.bf16 %v3760_v43, %v3760_v43 }
 0x3e4   : > { %1440 = vmatmul.mubr.bf16.vlgmr.msra.gmra.mrb[4].mxu0 %v1406_v44  ;;  %2627 = vmatmul.mubr.bf16.vlgmr.msra.gmra.mrb[4].mxu1 %v1406_v44 }
 0x3e5   : > { %1520 = vmatpush1.bf16.msra.mxu0 %v3610_v53  ;;  %2631 = vmatpush3.bf16.msra.mxu1 %v3637_v61 }
 0x3e6   : > { %1521 = vmatprep.subr.bf16.mxu0 %v3616_v56  ;;  %2632 = vmatprep.subr.bf16.mxu1 %v3225_v54 }
 0x3e7   : > { %1551 = vmatprep.mubr.bf16.mxu0 %v3226_v55  ;;  %2646 = vmatprep.mubr.msk.bf16.mxu1 %vm3227_vm0, %v3225_v54 }
 0x3e9   : > { %1522 = vmatpush1.bf16.msra.mxu0 %v3622_v57  ;;  %2633 = vmatpush3.bf16.msra.mxu1 %v3650_v0 }
 0x3ea   : > { %1523 = vmatprep.subr.bf16.mxu0 %v3626_v58  ;;  %2634 = vmatprep.subr.bf16.mxu1 %v3225_v54 }
 0x3ed   : > { %1524 = vmatpush1.bf16.msra.mxu0 %v3630_v59  ;;  %2635 = vmatpush3.bf16.msra.mxu1 %v3658_v2 }
 0x3ee   : > { %1525 = vmatprep.subr.bf16.mxu0 %v3634_v60  ;;  %2636 = vmatprep.subr.bf16.mxu1 %v3225_v54 }
 0x3f1   : > { %1526 = vmatpush1.bf16.msra.mxu0 %v3641_v62  ;;  %2637 = vmatpush3.bf16.msra.mxu1 %v3671_v5 }
 0x3f2   : > { %1527 = vmatprep.subr.bf16.mxu0 %v3646_v63  ;;  %2638 = vmatprep.subr.bf16.mxu1 %v3225_v54 }
 0x3f5   : > { %1528 = vmatpush1.bf16.msra.mxu0 %v3653_v1  ;;  %2639 = vmatpush3.bf16.msra.mxu1 %v3684_v8 }
 0x3f6   : > { %1529 = vmatprep.subr.bf16.mxu0 %v3662_v3  ;;  %2640 = vmatprep.subr.bf16.mxu1 %v3225_v54 }
 0x3f9   : > { %1530 = vmatpush1.bf16.msra.mxu0 %v3667_v4  ;;  %2641 = vmatpush3.bf16.msra.mxu1 %v3697_v11 }
 0x3fa   : > { %1531 = vmatprep.subr.bf16.mxu0 %v3675_v6  ;;  %2642 = vmatprep.subr.bf16.mxu1 %v3225_v54 }
 0x3fd   : > { %1532 = vmatpush1.bf16.msra.mxu0 %v3680_v7  ;;  %2643 = vmatpush3.bf16.msra.mxu1 %v3704_v12 }
 0x3fe   : > { %1533 = vmatprep.subr.bf16.mxu0 %v3688_v9  ;;  %2644 = vmatprep.subr.bf16.mxu1 %v3225_v54 }
 0x401   : > { %1534 = vmatpush1.bf16.msra.mxu0 %v3693_v10  ;;  %2645 = vmatpush3.bf16.msra.mxu1 %v3711_v13 }
 0x402   : > { %1631 = vmatprep.subr.bf16.mxu0 %v3607_v52  ;;  %2650 = vmatprep.subr.bf16.mxu1 %v3225_v54 }
 0x4b7   : > { %v1441_v46 = vpop.f32.mrb[4].mxu0  ;;  %v1482_v47 = vpop.f32.mrb[4].mxu1 }
 0x4b8   : > { %v1488_v48 = vadd.f32 %v1441_v46, %v1403_v45  ;;  %v1443_v50 = vpop.f32.mrb[5].mxu0  ;;  %v2628_v51 = vpop.f32.mrb[5].mxu1  ;;  %v1502_v25 = vadd.f32 %v3757_v31, %v1482_v47 }
 0x4b9   : > { %v1445_v14 = vpop.f32.mrb[6].mxu0  ;;  %v1485_v15 = vpop.f32.mrb[6].mxu1  ;;  %v1495_v19 = vadd.f32 %v1443_v50, %v1404_v49 }
 0x4ba   : > { %v2428_v16 = vmul.f32 -1.442695, %v1488_v48  ;;  %v1446_v17 = vpop.f32.mrb[7].mxu0  ;;  %v2629_v18 = vpop.f32.mrb[7].mxu1 }
 0x4bb   : > { %v2429_v20 = vmul.f32 -1.442695, %v1495_v19 }
 0x4bc   : > { %2947 = vpow2.f32 %v2428_v16 }
 0x4bd   : > { %2949 = vpow2.f32 %v2429_v20  ;;  %v1517_v20 = vld [vmem:[#allocation2 + $0x40] sm:$0xff] }
 0x4c6   : > { %v2948_v21 = vpop.eup %2947 }
 0x4c7   : > { %v1492_v22 = vadd.f32 1.0, %v2948_v21  ;;  %v2950_v23 = vpop.eup %2949 }
 0x4c8   : > { %v1499_v24 = vadd.f32 1.0, %v2950_v23 }
 0x4c9   : > { %2951 = vrcp.f32 %v1492_v22 }
 0x4ca   : > { %2953 = vrcp.f32 %v1499_v24 }
 0x4d3   : > { %v2952_v26 = vpop.eup %2951 }
 0x4d4   : > { %v1503_v28 = vmul.f32 %v2952_v26, %v1502_v25  ;;  %v2954_v30 = vpop.eup %2953 }
 0x4d5   : > { %v1506_v32 = vsub.f32 1.0, %v2954_v30  ;;  %v1508_v35 = vmul.f32 %v2954_v30, %v3760_v43  ;;  %v1627_v30 = vld [vmem:[#allocation2 + $0x48] sm:$0xff] }
 0x4d6   : > { %v1504_v29 = vadd.f32 %v1503_v28, %v1405_v27 }
 0x4d8   : > { %2955 = vtanh.f32 %v1504_v29 }
 0x4e2   : > { %v2956_v33 = vpop.eup %2955 }
 0x4e3   : > { %v1507_v34 = vmul.f32 %v2956_v33, %v1506_v32 }
 0x4e5   : > { %v3802_v36 = vadd.f32 %v1508_v35, %v1507_v34  ;;  %v1628_v35 = vld [vmem:[#allocation2 + $0x50] sm:$0xff] }
 0x4e7   : > { %1511 = vst [vmem:[#allocation3 + $0x8] sm:$0xff] %v3802_v36  ;;  %v1518_v37 = vpack.c.bf16 %v3802_v36, %v3802_v36 }
 0x4e9   : > { %1552 = vmatmul.mubr.bf16.vlgmr.msra.gmra.mrb[8].mxu0 %v1518_v37  ;;  %2647 = vmatmul.mubr.bf16.vlgmr.msra.gmra.mrb[8].mxu1 %v1518_v37 }
 0x4ea   : > { %1632 = vmatpush1.bf16.msra.mxu0 %v3610_v53  ;;  %2651 = vmatpush3.bf16.msra.mxu1 %v3637_v61 }
 0x4eb   : > { %1633 = vmatprep.subr.bf16.mxu0 %v3616_v56  ;;  %2652 = vmatprep.subr.bf16.mxu1 %v3225_v54 }
 0x4ec   : > { %1663 = vmatprep.mubr.bf16.mxu0 %v3226_v55  ;;  %2666 = vmatprep.mubr.msk.bf16.mxu1 %vm3227_vm0, %v3225_v54 }
 0x4ee   : > { %1634 = vmatpush1.bf16.msra.mxu0 %v3622_v57  ;;  %2653 = vmatpush3.bf16.msra.mxu1 %v3650_v0 }
 0x4ef   : > { %1635 = vmatprep.subr.bf16.mxu0 %v3626_v58  ;;  %2654 = vmatprep.subr.bf16.mxu1 %v3225_v54 }
 0x4f2   : > { %1636 = vmatpush1.bf16.msra.mxu0 %v3630_v59  ;;  %2655 = vmatpush3.bf16.msra.mxu1 %v3658_v2 }
 0x4f3   : > { %1637 = vmatprep.subr.bf16.mxu0 %v3634_v60  ;;  %2656 = vmatprep.subr.bf16.mxu1 %v3225_v54 }
 0x4f6   : > { %1638 = vmatpush1.bf16.msra.mxu0 %v3641_v62  ;;  %2657 = vmatpush3.bf16.msra.mxu1 %v3671_v5 }
 0x4f7   : > { %1639 = vmatprep.subr.bf16.mxu0 %v3646_v63  ;;  %2658 = vmatprep.subr.bf16.mxu1 %v3225_v54 }
 0x4fa   : > { %1640 = vmatpush1.bf16.msra.mxu0 %v3653_v1  ;;  %2659 = vmatpush3.bf16.msra.mxu1 %v3684_v8 }
 0x4fb   : > { %1641 = vmatprep.subr.bf16.mxu0 %v3662_v3  ;;  %2660 = vmatprep.subr.bf16.mxu1 %v3225_v54 }
 0x4fe   : > { %1642 = vmatpush1.bf16.msra.mxu0 %v3667_v4  ;;  %2661 = vmatpush3.bf16.msra.mxu1 %v3697_v11 }
 0x4ff   : > { %1643 = vmatprep.subr.bf16.mxu0 %v3675_v6  ;;  %2662 = vmatprep.subr.bf16.mxu1 %v3225_v54 }
 0x502   : > { %1644 = vmatpush1.bf16.msra.mxu0 %v3680_v7  ;;  %2663 = vmatpush3.bf16.msra.mxu1 %v3704_v12 }
 0x503   : > { %1645 = vmatprep.subr.bf16.mxu0 %v3688_v9  ;;  %2664 = vmatprep.subr.bf16.mxu1 %v3225_v54 }
 0x506   : > { %1646 = vmatpush1.bf16.msra.mxu0 %v3693_v10  ;;  %2665 = vmatpush3.bf16.msra.mxu1 %v3711_v13 }
 0x507   : > { %1743 = vmatprep.subr.bf16.mxu0 %v3607_v52  ;;  %2670 = vmatprep.subr.bf16.mxu1 %v3225_v54 }
 0x5bc   : > { %v1553_v39 = vpop.f32.mrb[8].mxu0  ;;  %v1594_v40 = vpop.f32.mrb[8].mxu1 }
 0x5bd   : > { %v1600_v41 = vadd.f32 %v1553_v39, %v1515_v38  ;;  %v1555_v43 = vpop.f32.mrb[9].mxu0  ;;  %v2648_v44 = vpop.f32.mrb[9].mxu1  ;;  %v1614_v18 = vadd.f32 %v3757_v31, %v1594_v40 }
 0x5be   : > { %v1557_v45 = vpop.f32.mrb[10].mxu0  ;;  %v1597_v46 = vpop.f32.mrb[10].mxu1  ;;  %v1607_v50 = vadd.f32 %v1555_v43, %v1516_v42 }
 0x5bf   : > { %v2430_v47 = vmul.f32 -1.442695, %v1600_v41  ;;  %v1558_v48 = vpop.f32.mrb[11].mxu0  ;;  %v2649_v49 = vpop.f32.mrb[11].mxu1 }
 0x5c0   : > { %v2431_v51 = vmul.f32 -1.442695, %v1607_v50 }
 0x5c1   : > { %2957 = vpow2.f32 %v2430_v47 }
 0x5c2   : > { %2959 = vpow2.f32 %v2431_v51  ;;  %v1629_v51 = vld [vmem:[#allocation2 + $0x58] sm:$0xff] }
 0x5cb   : > { %v2958_v14 = vpop.eup %2957 }
 0x5cc   : > { %v1604_v15 = vadd.f32 1.0, %v2958_v14  ;;  %v2960_v16 = vpop.eup %2959 }
 0x5cd   : > { %v1611_v17 = vadd.f32 1.0, %v2960_v16 }
 0x5ce   : > { %2961 = vrcp.f32 %v1604_v15 }
 0x5cf   : > { %2963 = vrcp.f32 %v1611_v17 }
 0x5d8   : > { %v2962_v19 = vpop.eup %2961 }
 0x5d9   : > { %v1615_v21 = vmul.f32 %v2962_v19, %v1614_v18  ;;  %v2964_v23 = vpop.eup %2963 }
 0x5da   : > { %v1618_v24 = vsub.f32 1.0, %v2964_v23  ;;  %v1620_v27 = vmul.f32 %v2964_v23, %v3802_v36  ;;  %v1739_v23 = vld [vmem:[#allocation2 + $0x60] sm:$0xff] }
 0x5db   : > { %v1616_v22 = vadd.f32 %v1615_v21, %v1517_v20 }
 0x5dd   : > { %2965 = vtanh.f32 %v1616_v22 }
 0x5e7   : > { %v2966_v25 = vpop.eup %2965 }
 0x5e8   : > { %v1619_v26 = vmul.f32 %v2966_v25, %v1618_v24 }
 0x5ea   : > { %v3844_v28 = vadd.f32 %v1620_v27, %v1619_v26  ;;  %v1740_v27 = vld [vmem:[#allocation2 + $0x68] sm:$0xff] }
 0x5ec   : > { %1623 = vst [vmem:[#allocation3 + $0x10] sm:$0xff] %v3844_v28  ;;  %v1630_v29 = vpack.c.bf16 %v3844_v28, %v3844_v28 }
 0x5ee   : > { %1664 = vmatmul.mubr.bf16.vlgmr.msra.gmra.mrb[12].mxu0 %v1630_v29  ;;  %2667 = vmatmul.mubr.bf16.vlgmr.msra.gmra.mrb[12].mxu1 %v1630_v29 }
 0x5ef   : > { %1744 = vmatpush1.bf16.msra.mxu0 %v3610_v53  ;;  %2671 = vmatpush3.bf16.msra.mxu1 %v3637_v61 }
 0x5f0   : > { %1745 = vmatprep.subr.bf16.mxu0 %v3616_v56  ;;  %2672 = vmatprep.subr.bf16.mxu1 %v3225_v54 }
 0x5f1   : > { %1775 = vmatprep.mubr.bf16.mxu0 %v3226_v55  ;;  %2686 = vmatprep.mubr.msk.bf16.mxu1 %vm3227_vm0, %v3225_v54 }
 0x5f3   : > { %1746 = vmatpush1.bf16.msra.mxu0 %v3622_v57  ;;  %2673 = vmatpush3.bf16.msra.mxu1 %v3650_v0 }
 0x5f4   : > { %1747 = vmatprep.subr.bf16.mxu0 %v3626_v58  ;;  %2674 = vmatprep.subr.bf16.mxu1 %v3225_v54 }
 0x5f7   : > { %1748 = vmatpush1.bf16.msra.mxu0 %v3630_v59  ;;  %2675 = vmatpush3.bf16.msra.mxu1 %v3658_v2 }
 0x5f8   : > { %1749 = vmatprep.subr.bf16.mxu0 %v3634_v60  ;;  %2676 = vmatprep.subr.bf16.mxu1 %v3225_v54 }
 0x5fb   : > { %1750 = vmatpush1.bf16.msra.mxu0 %v3641_v62  ;;  %2677 = vmatpush3.bf16.msra.mxu1 %v3671_v5 }
 0x5fc   : > { %1751 = vmatprep.subr.bf16.mxu0 %v3646_v63  ;;  %2678 = vmatprep.subr.bf16.mxu1 %v3225_v54 }
 0x5ff   : > { %1752 = vmatpush1.bf16.msra.mxu0 %v3653_v1  ;;  %2679 = vmatpush3.bf16.msra.mxu1 %v3684_v8 }
 0x600   : > { %1753 = vmatprep.subr.bf16.mxu0 %v3662_v3  ;;  %2680 = vmatprep.subr.bf16.mxu1 %v3225_v54 }
 0x603   : > { %1754 = vmatpush1.bf16.msra.mxu0 %v3667_v4  ;;  %2681 = vmatpush3.bf16.msra.mxu1 %v3697_v11 }
 0x604   : > { %1755 = vmatprep.subr.bf16.mxu0 %v3675_v6  ;;  %2682 = vmatprep.subr.bf16.mxu1 %v3225_v54 }
 0x607   : > { %1756 = vmatpush1.bf16.msra.mxu0 %v3680_v7  ;;  %2683 = vmatpush3.bf16.msra.mxu1 %v3704_v12 }
 0x608   : > { %1757 = vmatprep.subr.bf16.mxu0 %v3688_v9  ;;  %2684 = vmatprep.subr.bf16.mxu1 %v3225_v54 }
 0x60b   : > { %1758 = vmatpush1.bf16.msra.mxu0 %v3693_v10  ;;  %2685 = vmatpush3.bf16.msra.mxu1 %v3711_v13 }
 0x60c   : > { %1855 = vmatprep.subr.bf16.mxu0 %v3607_v52  ;;  %2690 = vmatprep.subr.bf16.mxu1 %v3225_v54 }
 0x6c1   : > { %v1665_v32 = vpop.f32.mrb[12].mxu0  ;;  %v1706_v33 = vpop.f32.mrb[12].mxu1 }
 0x6c2   : > { %v1712_v34 = vadd.f32 %v1665_v32, %v1627_v30  ;;  %v1667_v36 = vpop.f32.mrb[13].mxu0  ;;  %v2668_v37 = vpop.f32.mrb[13].mxu1  ;;  %v1726_v49 = vadd.f32 %v3757_v31, %v1706_v33 }
 0x6c3   : > { %v1669_v38 = vpop.f32.mrb[14].mxu0  ;;  %v1709_v39 = vpop.f32.mrb[14].mxu1  ;;  %v1719_v43 = vadd.f32 %v1667_v36, %v1628_v35 }
 0x6c4   : > { %v2432_v40 = vmul.f32 -1.442695, %v1712_v34  ;;  %v1670_v41 = vpop.f32.mrb[15].mxu0  ;;  %v2669_v42 = vpop.f32.mrb[15].mxu1 }
 0x6c5   : > { %v2433_v44 = vmul.f32 -1.442695, %v1719_v43 }
 0x6c6   : > { %2967 = vpow2.f32 %v2432_v40 }
 0x6c7   : > { %2969 = vpow2.f32 %v2433_v44  ;;  %v1741_v44 = vld [vmem:[#allocation2 + $0x70] sm:$0xff] }
 0x6d0   : > { %v2968_v45 = vpop.eup %2967 }
 0x6d1   : > { %v1716_v46 = vadd.f32 1.0, %v2968_v45  ;;  %v2970_v47 = vpop.eup %2969 }
 0x6d2   : > { %v1723_v48 = vadd.f32 1.0, %v2970_v47 }
 0x6d3   : > { %2971 = vrcp.f32 %v1716_v46 }
 0x6d4   : > { %2973 = vrcp.f32 %v1723_v48 }
 0x6dd   : > { %v2972_v50 = vpop.eup %2971 }
 0x6de   : > { %v1727_v14 = vmul.f32 %v2972_v50, %v1726_v49  ;;  %v2974_v16 = vpop.eup %2973 }
 0x6df   : > { %v1730_v17 = vsub.f32 1.0, %v2974_v16  ;;  %v1732_v20 = vmul.f32 %v2974_v16, %v3844_v28 }
 0x6e0   : > { %v1728_v15 = vadd.f32 %v1727_v14, %v1629_v51 }
 0x6e2   : > { %2975 = vtanh.f32 %v1728_v15 }
 0x6ec   : > { %v2976_v18 = vpop.eup %2975 }
 0x6ed   : > { %v1731_v19 = vmul.f32 %v2976_v18, %v1730_v17 }
 0x6ef   : > { %v3886_v21 = vadd.f32 %v1732_v20, %v1731_v19 }
 0x6f1   : > { %1735 = vst [vmem:[#allocation3 + $0x18] sm:$0xff] %v3886_v21  ;;  %v1742_v22 = vpack.c.bf16 %v3886_v21, %v3886_v21 }
 0x6f3   : > { %1776 = vmatmul.mubr.bf16.vlgmr.msra.gmra.mrb[16].mxu0 %v1742_v22  ;;  %2687 = vmatmul.mubr.bf16.vlgmr.msra.gmra.mrb[16].mxu1 %v1742_v22 }
 0x6f4   : > { %1856 = vmatpush1.bf16.msra.mxu0 %v3610_v53  ;;  %2691 = vmatpush3.bf16.msra.mxu1 %v3637_v61 }
 0x6f5   : > { %1857 = vmatprep.subr.bf16.mxu0 %v3616_v56  ;;  %2692 = vmatprep.subr.bf16.mxu1 %v3225_v54 }
 0x6f6   : > { %1887 = vmatprep.mubr.bf16.mxu0 %v3226_v55  ;;  %2706 = vmatprep.mubr.msk.bf16.mxu1 %vm3227_vm0, %v3225_v54 }
 0x6f8   : > { %1858 = vmatpush1.bf16.msra.mxu0 %v3622_v57  ;;  %2693 = vmatpush3.bf16.msra.mxu1 %v3650_v0 }
 0x6f9   : > { %1859 = vmatprep.subr.bf16.mxu0 %v3626_v58  ;;  %2694 = vmatprep.subr.bf16.mxu1 %v3225_v54 }
 0x6fc   : > { %1860 = vmatpush1.bf16.msra.mxu0 %v3630_v59  ;;  %2695 = vmatpush3.bf16.msra.mxu1 %v3658_v2 }
 0x6fd   : > { %1861 = vmatprep.subr.bf16.mxu0 %v3634_v60  ;;  %2696 = vmatprep.subr.bf16.mxu1 %v3225_v54 }
 0x700   : > { %1862 = vmatpush1.bf16.msra.mxu0 %v3641_v62  ;;  %2697 = vmatpush3.bf16.msra.mxu1 %v3671_v5 }
 0x701   : > { %1863 = vmatprep.subr.bf16.mxu0 %v3646_v63  ;;  %2698 = vmatprep.subr.bf16.mxu1 %v3225_v54 }
 0x704   : > { %1864 = vmatpush1.bf16.msra.mxu0 %v3653_v1  ;;  %2699 = vmatpush3.bf16.msra.mxu1 %v3684_v8 }
 0x705   : > { %1865 = vmatprep.subr.bf16.mxu0 %v3662_v3  ;;  %2700 = vmatprep.subr.bf16.mxu1 %v3225_v54 }
 0x708   : > { %1866 = vmatpush1.bf16.msra.mxu0 %v3667_v4  ;;  %2701 = vmatpush3.bf16.msra.mxu1 %v3697_v11 }
 0x709   : > { %1867 = vmatprep.subr.bf16.mxu0 %v3675_v6  ;;  %2702 = vmatprep.subr.bf16.mxu1 %v3225_v54 }
 0x70c   : > { %1868 = vmatpush1.bf16.msra.mxu0 %v3680_v7  ;;  %2703 = vmatpush3.bf16.msra.mxu1 %v3704_v12 }
 0x70d   : > { %1869 = vmatprep.subr.bf16.mxu0 %v3688_v9  ;;  %2704 = vmatprep.subr.bf16.mxu1 %v3225_v54 }
 0x710   : > { %1870 = vmatpush1.bf16.msra.mxu0 %v3693_v10  ;;  %2705 = vmatpush3.bf16.msra.mxu1 %v3711_v13 }
 0x711   : > { %1967 = vmatprep.subr.bf16.mxu0 %v3607_v52  ;;  %2710 = vmatprep.subr.bf16.mxu1 %v3225_v54 }
 0x7c6   : > { %v1777_v24 = vpop.f32.mrb[16].mxu0  ;;  %v1818_v25 = vpop.f32.mrb[16].mxu1 }
 0x7c7   : > { %v1824_v26 = vadd.f32 %v1777_v24, %v1739_v23  ;;  %v1779_v28 = vpop.f32.mrb[17].mxu0  ;;  %v2688_v29 = vpop.f32.mrb[17].mxu1  ;;  %v1838_v42 = vadd.f32 %v3757_v31, %v1818_v25 }
 0x7c8   : > { %v1781_v30 = vpop.f32.mrb[18].mxu0  ;;  %v1821_v32 = vpop.f32.mrb[18].mxu1  ;;  %v1831_v36 = vadd.f32 %v1779_v28, %v1740_v27  ;;  %v1853_v29 = vld [vmem:[#allocation2 + $0x88] sm:$0xff] }
 0x7c9   : > { %v2434_v33 = vmul.f32 -1.442695, %v1824_v26  ;;  %v1782_v34 = vpop.f32.mrb[19].mxu0  ;;  %v2689_v35 = vpop.f32.mrb[19].mxu1 }
 0x7ca   : > { %v2435_v37 = vmul.f32 -1.442695, %v1831_v36 }
 0x7cb   : > { %2977 = vpow2.f32 %v2434_v33 }
 0x7cc   : > { %2979 = vpow2.f32 %v2435_v37 }
 0x7d5   : > { %v2978_v38 = vpop.eup %2977 }
 0x7d6   : > { %v1828_v39 = vadd.f32 1.0, %v2978_v38  ;;  %v2980_v40 = vpop.eup %2979 }
 0x7d7   : > { %v1835_v41 = vadd.f32 1.0, %v2980_v40  ;;  %v3017_v40 = vld [vmem:[%s3523_s12] ss:$12 sps:$4 sm:$0xff]  }
 0x7d8   : > { %2981 = vrcp.f32 %v1828_v39 }
 0x7d9   : > { %2983 = vrcp.f32 %v1835_v41  ;;  %v3018_v41 = vld [vmem:[%s3523_s12 + $0x1c] ss:$12 sps:$4 sm:$0xff]  }
 0x7e2   : > { %v2982_v43 = vpop.eup %2981 }
 0x7e3   : > { %v1839_v45 = vmul.f32 %v2982_v43, %v1838_v42  ;;  %v2984_v47 = vpop.eup %2983  ;;  %v3019_v42 = vld [vmem:[%s3523_s12 + $0x18] ss:$12 sps:$4 sm:$0xff]   ;;  %v3020_v43 = vld [vmem:[%s3523_s12 + $0x34] ss:$12 sps:$4 sm:$0xff]  }
 0x7e4   : > { %v1842_v48 = vsub.f32 1.0, %v2984_v47  ;;  %v1844_v51 = vmul.f32 %v2984_v47, %v3886_v21  ;;  %v1965_v47 = vld [vmem:[#allocation2 + $0xa0] sm:$0xff] }
 0x7e5   : > { %v1840_v46 = vadd.f32 %v1839_v45, %v1741_v44  ;;  %v3021_v44 = vld [vmem:[%s3523_s12 + $0x30] ss:$12 sps:$4 sm:$0xff]  }
 0x7e7   : > { %2985 = vtanh.f32 %v1840_v46 }
 0x7f1   : > { %v2986_v49 = vpop.eup %2985 }
 0x7f2   : > { %v1843_v50 = vmul.f32 %v2986_v49, %v1842_v48 }
 0x7f4   : > { %v3928_v14 = vadd.f32 %v1844_v51, %v1843_v50 }
 0x7f6   : > { %1847 = vst [vmem:[#allocation3 + $0x20] sm:$0xff] %v3928_v14  ;;  %v1854_v15 = vpack.c.bf16 %v3928_v14, %v3928_v14 }
 0x7f8   : > { %1888 = vmatmul.mubr.bf16.vlgmr.msra.gmra.mrb[20].mxu0 %v1854_v15  ;;  %2707 = vmatmul.mubr.bf16.vlgmr.msra.gmra.mrb[20].mxu1 %v1854_v15 }
 0x7f9   : > { %1968 = vmatpush1.bf16.msra.mxu0 %v3610_v53  ;;  %2711 = vmatpush3.bf16.msra.mxu1 %v3637_v61  ;;  %v1851_v53 = vld [vmem:[#allocation2 + $0x78] sm:$0xff] }
 0x7fa   : > { %1969 = vmatprep.subr.bf16.mxu0 %v3616_v56  ;;  %2712 = vmatprep.subr.bf16.mxu1 %v3225_v54 }
 0x7fb   : > { %1999 = vmatprep.mubr.bf16.mxu0 %v3226_v55  ;;  %2726 = vmatprep.mubr.msk.bf16.mxu1 %vm3227_vm0, %v3225_v54 }
 0x7fd   : > { %1970 = vmatpush1.bf16.msra.mxu0 %v3622_v57  ;;  %2713 = vmatpush3.bf16.msra.mxu1 %v3650_v0 }
 0x7fe   : > { %1971 = vmatprep.subr.bf16.mxu0 %v3626_v58  ;;  %2714 = vmatprep.subr.bf16.mxu1 %v3225_v54 }
 0x801   : > { %1972 = vmatpush1.bf16.msra.mxu0 %v3630_v59  ;;  %2715 = vmatpush3.bf16.msra.mxu1 %v3658_v2  ;;  %v1852_v59 = vld [vmem:[#allocation2 + $0x80] sm:$0xff] }
 0x802   : > { %1973 = vmatprep.subr.bf16.mxu0 %v3634_v60  ;;  %2716 = vmatprep.subr.bf16.mxu1 %v3225_v54 }
 0x805   : > { %1974 = vmatpush1.bf16.msra.mxu0 %v3641_v62  ;;  %2717 = vmatpush3.bf16.msra.mxu1 %v3671_v5 }
 0x806   : > { %1975 = vmatprep.subr.bf16.mxu0 %v3646_v63  ;;  %2718 = vmatprep.subr.bf16.mxu1 %v3225_v54 }
 0x809   : > { %1976 = vmatpush1.bf16.msra.mxu0 %v3653_v1  ;;  %2719 = vmatpush3.bf16.msra.mxu1 %v3684_v8 }
 0x80a   : > { %1977 = vmatprep.subr.bf16.mxu0 %v3662_v3  ;;  %2720 = vmatprep.subr.bf16.mxu1 %v3225_v54 }
 0x80d   : > { %1978 = vmatpush1.bf16.msra.mxu0 %v3667_v4  ;;  %2721 = vmatpush3.bf16.msra.mxu1 %v3697_v11 }
 0x80e   : > { %1979 = vmatprep.subr.bf16.mxu0 %v3675_v6  ;;  %2722 = vmatprep.subr.bf16.mxu1 %v3225_v54 }
 0x811   : > { %1980 = vmatpush1.bf16.msra.mxu0 %v3680_v7  ;;  %2723 = vmatpush3.bf16.msra.mxu1 %v3704_v12 }
 0x812   : > { %1981 = vmatprep.subr.bf16.mxu0 %v3688_v9  ;;  %2724 = vmatprep.subr.bf16.mxu1 %v3225_v54 }
 0x815   : > { %1982 = vmatpush1.bf16.msra.mxu0 %v3693_v10  ;;  %2725 = vmatpush3.bf16.msra.mxu1 %v3711_v13 }
 0x816   : > { %2079 = vmatprep.subr.bf16.mxu0 %v3607_v52  ;;  %2730 = vmatprep.subr.bf16.mxu1 %v3225_v54 }
 0x8cb   : > { %v1889_v56 = vpop.f32.mrb[20].mxu0  ;;  %v1930_v57 = vpop.f32.mrb[20].mxu1 }
 0x8cc   : > { %v1936_v58 = vadd.f32 %v1889_v56, %v1851_v53  ;;  %v1891_v60 = vpop.f32.mrb[21].mxu0  ;;  %v2708_v16 = vpop.f32.mrb[21].mxu1  ;;  %v1950_v27 = vadd.f32 %v3757_v31, %v1930_v57 }
 0x8cd   : > { %v1893_v17 = vpop.f32.mrb[22].mxu0  ;;  %v1933_v18 = vpop.f32.mrb[22].mxu1  ;;  %v1943_v22 = vadd.f32 %v1891_v60, %v1852_v59 }
 0x8ce   : > { %v2436_v19 = vmul.f32 -1.442695, %v1936_v58  ;;  %v1894_v20 = vpop.f32.mrb[23].mxu0  ;;  %v2709_v21 = vpop.f32.mrb[23].mxu1  ;;  %v2075_v58 = vld [vmem:[#allocation2 + $0xa8] sm:$0xff]  ;;  %v2076_v17 = vld [vmem:[#allocation2 + $0xb0] sm:$0xff] }
 0x8cf   : > { %v2437_v23 = vmul.f32 -1.442695, %v1943_v22 }
 0x8d0   : > { %2987 = vpow2.f32 %v2436_v19 }
 0x8d1   : > { %2989 = vpow2.f32 %v2437_v23 }
 0x8da   : > { %v2988_v24 = vpop.eup %2987 }
 0x8db   : > { %v1940_v52 = vadd.f32 1.0, %v2988_v24  ;;  %v2990_v25 = vpop.eup %2989 }
 0x8dc   : > { %v1947_v26 = vadd.f32 1.0, %v2990_v25 }
 0x8dd   : > { %2991 = vrcp.f32 %v1940_v52 }
 0x8de   : > { %2993 = vrcp.f32 %v1947_v26 }
 0x8e7   : > { %v2992_v28 = vpop.eup %2991 }
 0x8e8   : > { %v1951_v30 = vmul.f32 %v2992_v28, %v1950_v27  ;;  %v2994_v33 = vpop.eup %2993 }
 0x8e9   : > { %v1954_v34 = vsub.f32 1.0, %v2994_v33  ;;  %v1956_v37 = vmul.f32 %v2994_v33, %v3928_v14  ;;  %v2077_v33 = vld [vmem:[#allocation2 + $0xb8] sm:$0xff] }
 0x8ea   : > { %v1952_v32 = vadd.f32 %v1951_v30, %v1853_v29 }
 0x8ec   : > { %2995 = vtanh.f32 %v1952_v32 }
 0x8f6   : > { %v2996_v35 = vpop.eup %2995 }
 0x8f7   : > { %v1955_v36 = vmul.f32 %v2996_v35, %v1954_v34 }
 0x8f9   : > { %v3970_v38 = vadd.f32 %v1956_v37, %v1955_v36 }
 0x8fb   : > { %1959 = vst [vmem:[#allocation3 + $0x28] sm:$0xff] %v3970_v38  ;;  %v1966_v39 = vpack.c.bf16 %v3970_v38, %v3970_v38 }
 0x8fd   : > { %2000 = vmatmul.mubr.bf16.vlgmr.msra.gmra.mrb[24].mxu0 %v1966_v39  ;;  %2727 = vmatmul.mubr.bf16.vlgmr.msra.gmra.mrb[24].mxu1 %v1966_v39 }
 0x8fe   : > { %2080 = vmatpush1.bf16.msra.mxu0 %v3017_v40  ;;  %2731 = vmatpush3.bf16.msra.mxu1 %v3637_v61  ;;  %v3022_v61 = vld [vmem:[%s3523_s12 + $0x4c] ss:$12 sps:$4 sm:$0xff]  }
 0x8ff   : > { %2081 = vmatprep.subr.bf16.mxu0 %v3018_v41  ;;  %2732 = vmatprep.subr.bf16.mxu1 %v3225_v54 }
 0x900   : > { %2111 = vmatprep.mubr.bf16.mxu0 %v3226_v55  ;;  %2746 = vmatprep.mubr.msk.bf16.mxu1 %vm3227_vm0, %v3225_v54  ;;  %v1963_v55 = vld [vmem:[#allocation2 + $0x90] sm:$0xff] }
 0x902   : > { %2082 = vmatpush1.bf16.msra.mxu0 %v3019_v42  ;;  %2733 = vmatpush3.bf16.msra.mxu1 %v3650_v0 }
 0x903   : > { %2083 = vmatprep.subr.bf16.mxu0 %v3020_v43  ;;  %2734 = vmatprep.subr.bf16.mxu1 %v3225_v54 }
 0x906   : > { %2084 = vmatpush1.bf16.msra.mxu0 %v3021_v44  ;;  %2735 = vmatpush3.bf16.msra.mxu1 %v3658_v2 }
 0x907   : > { %2085 = vmatprep.subr.bf16.mxu0 %v3022_v61  ;;  %2736 = vmatprep.subr.bf16.mxu1 %v3225_v54 }
 0x90a   : > { %2086 = vmatpush1.bf16.msra.mxu0 %v3641_v62  ;;  %2737 = vmatpush3.bf16.msra.mxu1 %v3671_v5 }
 0x90b   : > { %2087 = vmatprep.subr.bf16.mxu0 %v3646_v63  ;;  %2738 = vmatprep.subr.bf16.mxu1 %v3225_v54 }
 0x90e   : > { %2088 = vmatpush1.bf16.msra.mxu0 %v3653_v1  ;;  %2739 = vmatpush3.bf16.msra.mxu1 %v3684_v8  ;;  %v1964_v1 = vld [vmem:[#allocation2 + $0x98] sm:$0xff] }
 0x90f   : > { %2089 = vmatprep.subr.bf16.mxu0 %v3662_v3  ;;  %2740 = vmatprep.subr.bf16.mxu1 %v3225_v54 }
 0x912   : > { %2090 = vmatpush1.bf16.msra.mxu0 %v3667_v4  ;;  %2741 = vmatpush3.bf16.msra.mxu1 %v3697_v11 }
 0x913   : > { %2091 = vmatprep.subr.bf16.mxu0 %v3675_v6  ;;  %2742 = vmatprep.subr.bf16.mxu1 %v3225_v54 }
 0x916   : > { %2092 = vmatpush1.bf16.msra.mxu0 %v3680_v7  ;;  %2743 = vmatpush3.bf16.msra.mxu1 %v3704_v12 }
 0x917   : > { %2093 = vmatprep.subr.bf16.mxu0 %v3688_v9  ;;  %2744 = vmatprep.subr.bf16.mxu1 %v3225_v54 }
 0x91a   : > { %2094 = vmatpush1.bf16.msra.mxu0 %v3693_v10  ;;  %2745 = vmatpush3.bf16.msra.mxu1 %v3711_v13 }
 0x9d0   : > { %v2001_v62 = vpop.f32.mrb[24].mxu0  ;;  %v2042_v63 = vpop.f32.mrb[24].mxu1 }
 0x9d1   : > { %v2048_v0 = vadd.f32 %v2001_v62, %v1963_v55  ;;  %v2003_v2 = vpop.f32.mrb[25].mxu0  ;;  %v2728_v3 = vpop.f32.mrb[25].mxu1  ;;  %v2062_v45 = vadd.f32 %v3757_v31, %v2042_v63 }
 0x9d2   : > { %v2005_v4 = vpop.f32.mrb[26].mxu0  ;;  %v2045_v5 = vpop.f32.mrb[26].mxu1  ;;  %v2055_v11 = vadd.f32 %v2003_v2, %v1964_v1 }
 0x9d3   : > { %v2438_v6 = vmul.f32 -1.442695, %v2048_v0  ;;  %v2006_v7 = vpop.f32.mrb[27].mxu0  ;;  %v2729_v8 = vpop.f32.mrb[27].mxu1 }
 0x9d4   : > { %v2439_v9 = vmul.f32 -1.442695, %v2055_v11 }
 0x9d5   : > { %2997 = vpow2.f32 %v2438_v6 }
 0x9d6   : > { %2999 = vpow2.f32 %v2439_v9 }
 0x9df   : > { %v2998_v54 = vpop.eup %2997 }
 0x9e0   : > { %v2052_v10 = vadd.f32 1.0, %v2998_v54  ;;  %v3000_v12 = vpop.eup %2999 }
 0x9e1   : > { %v2059_v13 = vadd.f32 1.0, %v3000_v12 }
 0x9e2   : > { %3001 = vrcp.f32 %v2052_v10 }
 0x9e3   : > { %3003 = vrcp.f32 %v2059_v13 }
 0x9ec   : > { %v3002_v46 = vpop.eup %3001 }
 0x9ed   : > { %v2063_v48 = vmul.f32 %v3002_v46, %v2062_v45  ;;  %v3004_v50 = vpop.eup %3003 }
 0x9ee   : > { %v2066_v51 = vsub.f32 1.0, %v3004_v50  ;;  %v2068_v53 = vmul.f32 %v3004_v50, %v3970_v38 }
 0x9ef   : > { %v2064_v49 = vadd.f32 %v2063_v48, %v1965_v47 }
 0x9f1   : > { %3005 = vtanh.f32 %v2064_v49 }
 0x9fb   : > { %v3006_v14 = vpop.eup %3005 }
 0x9fc   : > { %v2067_v15 = vmul.f32 %v3006_v14, %v2066_v51 }
 0x9fe   : > { %v2069_v56 = vadd.f32 %v2068_v53, %v2067_v15 }
 0xa00   : > { %2071 = vst [vmem:[#allocation3 + $0x30] sm:$0xff] %v2069_v56  ;;  %v2078_v57 = vpack.c.bf16 %v2069_v56, %v2069_v56 }
 0xa02   : > { %2112 = vmatmul.mubr.bf16.vlgmr.msra.gmra.mrb[28].mxu0 %v2078_v57  ;;  %2747 = vmatmul.mubr.bf16.vlgmr.msra.gmra.mrb[28].mxu1 %v2078_v57 }
 0xad5   : > { %v2113_v59 = vpop.f32.mrb[28].mxu0  ;;  %v2154_v60 = vpop.f32.mrb[28].mxu1 }
 0xad6   : > { %v2160_v16 = vadd.f32 %v2113_v59, %v2075_v58  ;;  %v2115_v18 = vpop.f32.mrb[29].mxu0  ;;  %v2748_v19 = vpop.f32.mrb[29].mxu1  ;;  %v2174_v30 = vadd.f32 %v3757_v31, %v2154_v60 }
 0xad7   : > { %v2117_v20 = vpop.f32.mrb[30].mxu0  ;;  %v2157_v21 = vpop.f32.mrb[30].mxu1  ;;  %v2167_v52 = vadd.f32 %v2115_v18, %v2076_v17 }
 0xad8   : > { %v2440_v22 = vmul.f32 -1.442695, %v2160_v16  ;;  %v2118_v23 = vpop.f32.mrb[31].mxu0  ;;  %v2749_v24 = vpop.f32.mrb[31].mxu1 }
 0xad9   : > { %v2441_v25 = vmul.f32 -1.442695, %v2167_v52 }
 0xada   : > { %3007 = vpow2.f32 %v2440_v22 }
 0xadb   : > { %3009 = vpow2.f32 %v2441_v25 }
 0xae4   : > { %v3008_v26 = vpop.eup %3007 }
 0xae5   : > { %v2164_v27 = vadd.f32 1.0, %v3008_v26  ;;  %v3010_v28 = vpop.eup %3009 }
 0xae6   : > { %v2171_v29 = vadd.f32 1.0, %v3010_v28 }
 0xae7   : > { %3011 = vrcp.f32 %v2164_v27 }
 0xae8   : > { %3013 = vrcp.f32 %v2171_v29 }
 0xaf1   : > { %v3012_v32 = vpop.eup %3011 }
 0xaf2   : > { %v2175_v34 = vmul.f32 %v3012_v32, %v2174_v30  ;;  %v3014_v36 = vpop.eup %3013 }
 0xaf3   : > { %v2178_v37 = vsub.f32 1.0, %v3014_v36  ;;  %v2180_v40 = vmul.f32 %v3014_v36, %v2069_v56 }
 0xaf4   : > { %v2176_v35 = vadd.f32 %v2175_v34, %v2077_v33 }
 0xaf6   : > { %3015 = vtanh.f32 %v2176_v35 }
 0xb00   : > { %v3016_v38 = vpop.eup %3015 }
 0xb01   : > { %v2179_v39 = vmul.f32 %v3016_v38, %v2178_v37 }
 0xb03   : > { %v2181_v41 = vadd.f32 %v2180_v40, %v2179_v39 }
 0xb05   : > { %2183 = vst [vmem:[#allocation3 + $0x38] sm:$0xff] %v2181_v41  ;;  %2184 = vst [vmem:[%s3525_s17] sm:$0xff] %v2181_v41 }
 0xb06   : > { %3152 = shalt.err (!%p3149_p11)
}
 0xb07   : > { %s3153_s19 = scalar_lea.hbm %s4016_s20, 128  ;;  %s3157_s12 = scalar_lea.hbm %s4068_s7, 256 }
 0xb08   : > { %p3154_p13 = scmp.ne.s32.totalorder %s4016_s20, %s3153_s19  ;;  %p3158_p8 = scmp.lt.u32.totalorder %s4016_s20, %s4068_s7 }
 0xb09   : > { %p3159_p9 = scmp.lt.u32.totalorder %s3157_s12, %s3153_s19  ;;  %p3161_p10 = scmp.lt.u32.totalorder %s3153_s19, %s4016_s20 }
 0xb0a   : > { %p3155_p7 = pnand %p3154_p13, %p4102_p2 }
 0xb0b   : > { %p3160_p12 = por %p3159_p9, %p3158_p8 }
 0xb0c   : > { %p3156_p3 = pneg %p3155_p7 }
 0xb0d   : > { %p3162_p4 = por %p3161_p10, %p3160_p12 }
 0xb0f   : > { %p3163_p1 = pnand %p3162_p4, %p3156_p3 }
 0xb11   : > { %3166 = shalt.err (!%p3163_p1)
}
 0xb12   : > { %2768 = dma.vmem_to_hbm [thread:$0]  (%p4102_p2), %s4018_s29, 128, %s4016_s20, %s2186_s30  }
 0xb13 PF: > { %s4103_s18 = sld [smem:[#allocation18_spill]]  ;;  %s2211_s22 = sand.u32 1, %s3201_s24  }
 0xb14   : > { %p4105_p6 = scmp.ge.s32.totalorder %s3213_s27, 2  ;;  %s2212_s15 = scalar_lea.sflag [#allocation6], %s2211_s22 }
 0xb19   : > { %p4104_p5 = scmp.ne.s32.totalorder %s4103_s18, 0 }
 0xb1b   : > { %p2785_p0 = pnand %p4105_p6, %p4104_p5 }
 0xb1d   : > { %3196 = dma.done.wait (!%p2785_p0), %s2212_s15, 128  }
 0xb1e   : > { %3198 = vsyncadd (!%p2785_p0), %s2212_s15, 4294967168  ;;  %s4106_s27 = sld [smem:[#allocation16_spill]]  ;;  %s4107_s21 = sld [smem:[#allocation17_spill]] }
 0xb1f   : > { %s4108_s24 = smov %s3205_s25  ;;  %s4109_s25 = smov %s3209_s26 }
 0xb24   : > { %p19_p11 = scmp.ge.s32.totalorder %s4106_s27, 4   ;;  %s4110_s26 = smov %s4107_s21 }
 0xb26   :  { %21 = sbr.rel (!%p19_p11) target bundleno = 7 (0x7), region = 140 }
 0xb2d   :  { %2217 = vsyncpa [#allocation5], 1 }
 0xb2e   :  { %2219 = vsyncpa [#allocation5 + $0x1], 1 }
 0xb2f   :  { %2220 = vsyncpa [#allocation8], 1 }
 0xb30   :  { %2221 = vsyncpa [#allocation6], 1 }
 0xb31   :  { %2223 = vsyncpa [#allocation6 + $0x1], 1 }

</bundles_post_ra>
